<compile_context>
chip_gen: v6e
topology: v6e:2x2x1
jax: 0.10.0
libtpu: 0.0.40
codegen_flags: <defaults>
</compile_context>

<pallas_src>
import functools
import jax
import jax.numpy as jnp
import numpy as np
from jax.experimental import pallas as pl
from jax.experimental.pallas import tpu as pltpu


# ---------------------------------------------------------------------------
# Fused forward kernel: ONE grid step for the whole batch, activations stay in VMEM
# ---------------------------------------------------------------------------

def _fused_tcn_kernel(x_ref, emb_w_ref, emb_b_ref, tcn_w_ref, tcn_b_ref,
                      proj_w_ref, proj_b_ref, o_ref, buf,
                      *, B, L, K, pred_len, dils, pad_a, W, d_model):
    # Zero only the causal-padding rows of each per-batch window.  Single grid step
    # => done exactly once; data rows [pad_a, pad_a+L) are always written before read.
    zpad = jnp.zeros((pad_a, d_model), jnp.float32)
    for b in range(B):
        buf[pl.ds(b * W, pad_a), :] = zpad

    # enc_embedding over ALL B*L tokens in one MXU pass: (B*L, enc_in) @ (enc_in, d_model)
    x = jnp.concatenate([x_ref[b] for b in range(B)], axis=0)          # (B*L, enc_in)
    cur = jnp.dot(x, emb_w_ref[...], preferred_element_type=jnp.float32) + emb_b_ref[...]

    def store_cur(val):
        # Aligned stores: b*W and b*W + pad_a are multiples of 8 sublanes.
        for b in range(B):
            buf[pl.ds(b * W + pad_a, L), :] = val[b * L:(b + 1) * L, :]

    def conv_im2col(dil, w_mat, bias):
        # Load each padded window ONCE (aligned read), build the K dilated causal taps
        # as static value slices, fuse lane-wise into a (B*L, K*d_model) tile and hit
        # the MXU once per conv with a 128-deep contraction.
        cols = []
        for b in range(B):
            win = buf[pl.ds(b * W, W), :]                               # (W, d_model)
            taps = []
            for k in range(K):
                s = pad_a - (K - 1 - k) * dil                           # static offset
                taps.append(win[s:s + L, :])
            cols.append(jnp.concatenate(taps, axis=-1))                 # (L, K*d_model)
        col = jnp.concatenate(cols, axis=0)                             # (B*L, K*d_model)
        return jnp.dot(col, w_mat, preferred_element_type=jnp.float32) + bias

    # TCN stack (Python loop -> fully unrolled; fine at small e_layers).
    for i, dil in enumerate(dils):
        res = cur                                                       # residual as value
        store_cur(cur)
        h1 = jnp.maximum(conv_im2col(dil, tcn_w_ref[i, 0], tcn_b_ref[i, 0]), 0.0)
        store_cur(h1)
        h2 = jnp.maximum(conv_im2col(dil, tcn_w_ref[i, 1], tcn_b_ref[i, 1]), 0.0)
        cur = jnp.maximum(h2 + res, 0.0)                                # residual + relu

    # Project ONLY the last pred_len tokens of every batch element (one MXU pass).
    ys = [cur[b * L + L - pred_len:(b + 1) * L, :] for b in range(B)]
    y = jnp.concatenate(ys, axis=0)                                     # (B*pred_len, d_model)
    dec = jnp.dot(y, proj_w_ref[...], preferred_element_type=jnp.float32) + proj_b_ref[...]
    for b in range(B):
        # c_out=7 -> masked store; tiny (B*pred_len*c_out elements), acceptable here.
        o_ref[b] = dec[b * pred_len:(b + 1) * pred_len, :].astype(o_ref.dtype)


# ---------------------------------------------------------------------------
# Wrapper: single pallas_call (single grid step) for the whole forward
# ---------------------------------------------------------------------------

def model_forward(params, x_enc, x_mark_enc, x_dec, x_mark_dec, *, pred_len):
    # x_mark_enc / x_dec / x_mark_dec are unused by the reference forward.
    B, L, enc_in = x_enc.shape
    d_model = params["emb_w"].shape[1]
    c_out = params["proj_w"].shape[1]
    e_layers, _, KC, _ = params["tcn_w"].shape
    K = KC // d_model
    dils = tuple(params["dilations"])
    pad_max = (K - 1) * max(dils)
    pad_a = ((pad_max + 7) // 8) * 8          # sublane-aligned causal pad region
    W = ((pad_a + L + 7) // 8) * 8            # per-batch scratch window, sublane aligned

    kern = functools.partial(_fused_tcn_kernel, B=B, L=L, K=K, pred_len=pred_len,
                             dils=dils, pad_a=pad_a, W=W, d_model=d_model)

    return pl.pallas_call(
        kern,
        out_shape=jax.ShapeDtypeStruct((B, pred_len, c_out), x_enc.dtype),
        grid=(1,),
        in_specs=[
            pl.BlockSpec((B, L, enc_in), lambda i: (0, 0, 0)),                        # x_enc
            pl.BlockSpec((enc_in, d_model), lambda i: (0, 0)),                        # emb_w
            pl.BlockSpec((1, d_model), lambda i: (0, 0)),                             # emb_b
            pl.BlockSpec((e_layers, 2, K * d_model, d_model), lambda i: (0, 0, 0, 0)),  # tcn_w
            pl.BlockSpec((e_layers, 2, 1, d_model), lambda i: (0, 0, 0, 0)),          # tcn_b
            pl.BlockSpec((d_model, c_out), lambda i: (0, 0)),                         # proj_w
            pl.BlockSpec((1, c_out), lambda i: (0, 0)),                               # proj_b
        ],
        out_specs=pl.BlockSpec((B, pred_len, c_out), lambda i: (0, 0, 0)),
        scratch_shapes=[
            pltpu.VMEM((B * W, d_model), jnp.float32),   # per-batch padded activation windows
        ],
        compiler_params=pltpu.CompilerParams(dimension_semantics=("arbitrary",)),
    )(x_enc, params["emb_w"], params["emb_b"], params["tcn_w"], params["tcn_b"],
      params["proj_w"], params["proj_b"])


# ---------------------------------------------------------------------------
# Parameter init (conv weights stored directly in im2col layout) + pure-JAX reference
# ---------------------------------------------------------------------------

def init_params(key, *, enc_in, d_model, c_out, e_layers, kernel_size):
    k = jax.random.split(key, 6)
    s = 0.1
    return {
        "emb_w": s * jax.random.normal(k[0], (enc_in, d_model), jnp.float32),
        "emb_b": s * jax.random.normal(k[1], (1, d_model), jnp.float32),
        "proj_w": s * jax.random.normal(k[2], (d_model, c_out), jnp.float32),
        "proj_b": s * jax.random.normal(k[3], (1, c_out), jnp.float32),
        # (layer, conv_idx, K*Cin, Cout): rows ordered [tap0 chans | tap1 chans | ...]
        "tcn_w": s * jax.random.normal(
            k[4], (e_layers, 2, kernel_size * d_model, d_model), jnp.float32),
        "tcn_b": s * jax.random.normal(k[5], (e_layers, 2, 1, d_model), jnp.float32),
        "dilations": tuple(2 ** i for i in range(e_layers)),
    }


def reference_forward(params, x_enc, *, pred_len, kernel_size):
    B, L, _ = x_enc.shape
    K = kernel_size
    with jax.default_matmul_precision("highest"):
        h = jnp.einsum("ble,ed->bld", x_enc, params["emb_w"]) + params["emb_b"]
        for i, dil in enumerate(params["dilations"]):
            pad = (K - 1) * dil

            def conv(z, w_mat, b):
                zp = jnp.pad(z, ((0, 0), (pad, 0), (0, 0)))
                col = jnp.concatenate(
                    [zp[:, k * dil:k * dil + L, :] for k in range(K)], axis=-1)
                return jnp.einsum("blc,cd->bld", col, w_mat) + b

            res = h
            h1 = jax.nn.relu(conv(h, params["tcn_w"][i, 0], params["tcn_b"][i, 0]))
            h2 = jax.nn.relu(conv(h1, params["tcn_w"][i, 1], params["tcn_b"][i, 1]))
            h = jax.nn.relu(h2 + res)
        out = (jnp.einsum("bld,dc->blc", h[:, -pred_len:, :], params["proj_w"])
               + params["proj_b"])
    return out


# ---------------------------------------------------------------------------
# Main
# ---------------------------------------------------------------------------

if __name__ == "__main__":
    B, seq_len, label_len, pred_len = 2, 16, 8, 4
    enc_in, dec_in, c_out, d_model = 7, 7, 7, 32
    e_layers, kernel_size = 2, 4

    key = jax.random.PRNGKey(0)
    kp, kx, kxm, kd, kdm = jax.random.split(key, 5)
    params = init_params(kp, enc_in=enc_in, d_model=d_model, c_out=c_out,
                         e_layers=e_layers, kernel_size=kernel_size)

    x_enc = jax.random.normal(kx, (B, seq_len, enc_in), jnp.float32)
    x_mark_enc = jax.random.normal(kxm, (B, seq_len, 4), jnp.float32)                # unused
    x_dec = jax.random.normal(kd, (B, label_len + pred_len, dec_in), jnp.float32)    # unused
    x_mark_dec = jax.random.normal(kdm, (B, label_len + pred_len, 4), jnp.float32)   # unused

    dec_out = model_forward(params, x_enc, x_mark_enc, x_dec, x_mark_dec,
                            pred_len=pred_len)
    dec_out = jax.block_until_ready(dec_out)
    assert dec_out.shape == (B, pred_len, c_out), dec_out.shape

    ref = reference_forward(params, x_enc, pred_len=pred_len, kernel_size=kernel_size)
    np.testing.assert_allclose(np.asarray(dec_out), np.asarray(ref), rtol=1e-3, atol=1e-3)

    print("KERNEL_OK")
</pallas_src>

<mosaic_0001>
module attributes {stable_mosaic.version = 11 : i64} {
  func.func @_fused_tcn_kernel(%arg0: i32, %arg1: memref<2x16x7xf32, #tpu.memory_space<vmem>>, %arg2: memref<7x32xf32, #tpu.memory_space<vmem>>, %arg3: memref<1x32xf32, #tpu.memory_space<vmem>>, %arg4: memref<2x2x128x32xf32, #tpu.memory_space<vmem>>, %arg5: memref<2x2x1x32xf32, #tpu.memory_space<vmem>>, %arg6: memref<32x7xf32, #tpu.memory_space<vmem>>, %arg7: memref<1x7xf32, #tpu.memory_space<vmem>>, %arg8: memref<2x4x7xf32, #tpu.memory_space<vmem>>, %arg9: memref<48x32xf32, #tpu.memory_space<vmem>>) attributes {dimension_semantics = [#tpu.dimension_semantics<arbitrary>], iteration_bounds = array<i64: 1>, scalar_prefetch = 0 : i64, scratch_operands = 1 : i64, tpu.core_type = #tpu.core_type<tc>, window_params = [{pipeline_mode = #tpu.pipeline_mode<synchronous>, transform_indices = @transform_0, window_bounds = array<i64: 2, 16, 7>}, {pipeline_mode = #tpu.pipeline_mode<synchronous>, transform_indices = @transform_1, window_bounds = array<i64: 7, 32>}, {pipeline_mode = #tpu.pipeline_mode<synchronous>, transform_indices = @transform_2, window_bounds = array<i64: 1, 32>}, {pipeline_mode = #tpu.pipeline_mode<synchronous>, transform_indices = @transform_3, window_bounds = array<i64: 2, 2, 128, 32>}, {pipeline_mode = #tpu.pipeline_mode<synchronous>, transform_indices = @transform_4, window_bounds = array<i64: 2, 2, 1, 32>}, {pipeline_mode = #tpu.pipeline_mode<synchronous>, transform_indices = @transform_5, window_bounds = array<i64: 32, 7>}, {pipeline_mode = #tpu.pipeline_mode<synchronous>, transform_indices = @transform_6, window_bounds = array<i64: 1, 7>}, {pipeline_mode = #tpu.pipeline_mode<synchronous>, transform_indices = @transform_7, window_bounds = array<i64: 2, 4, 7>}]} {
    %cst = arith.constant 0.000000e+00 : f32
    %0 = vector.broadcast %cst : f32 to vector<8x32xf32>
    %c0 = arith.constant 0 : index
    %c0_0 = arith.constant 0 : index
    %1 = vector.load %arg9[%c0, %c0_0] : memref<48x32xf32, #tpu.memory_space<vmem>>, vector<8x32xf32>
    tpu.vector_store %arg9[%c0, %c0_0], %0 {strides = array<i32>} : memref<48x32xf32, #tpu.memory_space<vmem>>, vector<8x32xf32>,
    %c24 = arith.constant 24 : index
    %c0_1 = arith.constant 0 : index
    %2 = vector.load %arg9[%c24, %c0_1] : memref<48x32xf32, #tpu.memory_space<vmem>>, vector<8x32xf32>
    tpu.vector_store %arg9[%c24, %c0_1], %0 {strides = array<i32>} : memref<48x32xf32, #tpu.memory_space<vmem>>, vector<8x32xf32>,
    %c0_2 = arith.constant 0 : index
    %c0_3 = arith.constant 0 : index
    %c0_4 = arith.constant 0 : index
    %3 = vector.load %arg1[%c0_2, %c0_3, %c0_4] : memref<2x16x7xf32, #tpu.memory_space<vmem>>, vector<1x16x7xf32>
    %4 = vector.shape_cast %3 : vector<1x16x7xf32> to vector<16x7xf32>
    %c1 = arith.constant 1 : index
    %c0_5 = arith.constant 0 : index
    %c0_6 = arith.constant 0 : index
    %5 = vector.load %arg1[%c1, %c0_5, %c0_6] : memref<2x16x7xf32, #tpu.memory_space<vmem>>, vector<1x16x7xf32>
    %6 = vector.shape_cast %5 : vector<1x16x7xf32> to vector<16x7xf32>
    %7 = tpu.concatenate %4, %6 in 0 : vector<16x7xf32>, vector<16x7xf32> -> vector<32x7xf32>
    %c0_7 = arith.constant 0 : index
    %c0_8 = arith.constant 0 : index
    %8 = vector.load %arg2[%c0_7, %c0_8] : memref<7x32xf32, #tpu.memory_space<vmem>>, vector<7x32xf32>
    %cst_9 = arith.constant dense<0.000000e+00> : vector<32x32xf32>
    %9 = tpu.matmul %7, %8, %cst_9 {dimension_numbers = #tpu.dot_dimension_numbers<[1], [0], [0], [1], [0, 0, 1, 1], [], []>} : vector<32x7xf32>, vector<7x32xf32>, vector<32x32xf32> -> vector<32x32xf32>
    %c0_10 = arith.constant 0 : index
    %c0_11 = arith.constant 0 : index
    %10 = vector.load %arg3[%c0_10, %c0_11] : memref<1x32xf32, #tpu.memory_space<vmem>>, vector<1x32xf32>
    %11 = vector.broadcast %10 : vector<1x32xf32> to vector<32x32xf32>
    %12 = arith.addf %9, %11 : vector<32x32xf32>
    %13 = vector.extract_strided_slice %12 {offsets = [0, 0], sizes = [16, 32], strides = [1, 1]} : vector<32x32xf32> to vector<16x32xf32>
    %c8 = arith.constant 8 : index
    %c0_12 = arith.constant 0 : index
    %14 = vector.load %arg9[%c8, %c0_12] : memref<48x32xf32, #tpu.memory_space<vmem>>, vector<16x32xf32>
    tpu.vector_store %arg9[%c8, %c0_12], %13 {strides = array<i32>} : memref<48x32xf32, #tpu.memory_space<vmem>>, vector<16x32xf32>,
    %15 = vector.extract_strided_slice %12 {offsets = [16, 0], sizes = [16, 32], strides = [1, 1]} : vector<32x32xf32> to vector<16x32xf32>
    %c32 = arith.constant 32 : index
    %c0_13 = arith.constant 0 : index
    %16 = vector.load %arg9[%c32, %c0_13] : memref<48x32xf32, #tpu.memory_space<vmem>>, vector<16x32xf32>
    tpu.vector_store %arg9[%c32, %c0_13], %15 {strides = array<i32>} : memref<48x32xf32, #tpu.memory_space<vmem>>, vector<16x32xf32>,
    %c0_14 = arith.constant 0 : index
    %c0_15 = arith.constant 0 : index
    %c0_16 = arith.constant 0 : index
    %c0_17 = arith.constant 0 : index
    %17 = vector.load %arg4[%c0_14, %c0_15, %c0_16, %c0_17] : memref<2x2x128x32xf32, #tpu.memory_space<vmem>>, vector<1x1x128x32xf32>
    %18 = vector.shape_cast %17 : vector<1x1x128x32xf32> to vector<128x32xf32>
    %c0_18 = arith.constant 0 : index
    %c0_19 = arith.constant 0 : index
    %c0_20 = arith.constant 0 : index
    %c0_21 = arith.constant 0 : index
    %19 = vector.load %arg5[%c0_18, %c0_19, %c0_20, %c0_21] : memref<2x2x1x32xf32, #tpu.memory_space<vmem>>, vector<1x1x1x32xf32>
    %20 = vector.shape_cast %19 : vector<1x1x1x32xf32> to vector<1x32xf32>
    %c0_22 = arith.constant 0 : index
    %c0_23 = arith.constant 0 : index
    %21 = vector.load %arg9[%c0_22, %c0_23] : memref<48x32xf32, #tpu.memory_space<vmem>>, vector<24x32xf32>
    %22 = vector.extract_strided_slice %21 {offsets = [5, 0], sizes = [16, 32], strides = [1, 1]} : vector<24x32xf32> to vector<16x32xf32>
    %23 = vector.extract_strided_slice %21 {offsets = [6, 0], sizes = [16, 32], strides = [1, 1]} : vector<24x32xf32> to vector<16x32xf32>
    %24 = vector.extract_strided_slice %21 {offsets = [7, 0], sizes = [16, 32], strides = [1, 1]} : vector<24x32xf32> to vector<16x32xf32>
    %25 = vector.extract_strided_slice %21 {offsets = [8, 0], sizes = [16, 32], strides = [1, 1]} : vector<24x32xf32> to vector<16x32xf32>
    %26 = tpu.concatenate %22, %23, %24, %25 in 1 : vector<16x32xf32>, vector<16x32xf32>, vector<16x32xf32>, vector<16x32xf32> -> vector<16x128xf32>
    %c24_24 = arith.constant 24 : index
    %c0_25 = arith.constant 0 : index
    %27 = vector.load %arg9[%c24_24, %c0_25] : memref<48x32xf32, #tpu.memory_space<vmem>>, vector<24x32xf32>
    %28 = vector.extract_strided_slice %27 {offsets = [5, 0], sizes = [16, 32], strides = [1, 1]} : vector<24x32xf32> to vector<16x32xf32>
    %29 = vector.extract_strided_slice %27 {offsets = [6, 0], sizes = [16, 32], strides = [1, 1]} : vector<24x32xf32> to vector<16x32xf32>
    %30 = vector.extract_strided_slice %27 {offsets = [7, 0], sizes = [16, 32], strides = [1, 1]} : vector<24x32xf32> to vector<16x32xf32>
    %31 = vector.extract_strided_slice %27 {offsets = [8, 0], sizes = [16, 32], strides = [1, 1]} : vector<24x32xf32> to vector<16x32xf32>
    %32 = tpu.concatenate %28, %29, %30, %31 in 1 : vector<16x32xf32>, vector<16x32xf32>, vector<16x32xf32>, vector<16x32xf32> -> vector<16x128xf32>
    %33 = tpu.concatenate %26, %32 in 0 : vector<16x128xf32>, vector<16x128xf32> -> vector<32x128xf32>
    %cst_26 = arith.constant dense<0.000000e+00> : vector<32x32xf32>
    %34 = tpu.matmul %33, %18, %cst_26 {dimension_numbers = #tpu.dot_dimension_numbers<[1], [0], [0], [1], [0, 0, 1, 1], [], []>} : vector<32x128xf32>, vector<128x32xf32>, vector<32x32xf32> -> vector<32x32xf32>
    %35 = vector.broadcast %20 : vector<1x32xf32> to vector<32x32xf32>
    %36 = arith.addf %34, %35 : vector<32x32xf32>
    %cst_27 = arith.constant 0.000000e+00 : f32
    %37 = vector.broadcast %cst_27 : f32 to vector<32x32xf32>
    %38 = arith.maximumf %36, %37 : vector<32x32xf32>
    %39 = vector.extract_strided_slice %38 {offsets = [0, 0], sizes = [16, 32], strides = [1, 1]} : vector<32x32xf32> to vector<16x32xf32>
    %c8_28 = arith.constant 8 : index
    %c0_29 = arith.constant 0 : index
    %40 = vector.load %arg9[%c8_28, %c0_29] : memref<48x32xf32, #tpu.memory_space<vmem>>, vector<16x32xf32>
    tpu.vector_store %arg9[%c8_28, %c0_29], %39 {strides = array<i32>} : memref<48x32xf32, #tpu.memory_space<vmem>>, vector<16x32xf32>,
    %41 = vector.extract_strided_slice %38 {offsets = [16, 0], sizes = [16, 32], strides = [1, 1]} : vector<32x32xf32> to vector<16x32xf32>
    %c32_30 = arith.constant 32 : index
    %c0_31 = arith.constant 0 : index
    %42 = vector.load %arg9[%c32_30, %c0_31] : memref<48x32xf32, #tpu.memory_space<vmem>>, vector<16x32xf32>
    tpu.vector_store %arg9[%c32_30, %c0_31], %41 {strides = array<i32>} : memref<48x32xf32, #tpu.memory_space<vmem>>, vector<16x32xf32>,
    %c0_32 = arith.constant 0 : index
    %c1_33 = arith.constant 1 : index
    %c0_34 = arith.constant 0 : index
    %c0_35 = arith.constant 0 : index
    %43 = vector.load %arg4[%c0_32, %c1_33, %c0_34, %c0_35] : memref<2x2x128x32xf32, #tpu.memory_space<vmem>>, vector<1x1x128x32xf32>
    %44 = vector.shape_cast %43 : vector<1x1x128x32xf32> to vector<128x32xf32>
    %c0_36 = arith.constant 0 : index
    %c1_37 = arith.constant 1 : index
    %c0_38 = arith.constant 0 : index
    %c0_39 = arith.constant 0 : index
    %45 = vector.load %arg5[%c0_36, %c1_37, %c0_38, %c0_39] : memref<2x2x1x32xf32, #tpu.memory_space<vmem>>, vector<1x1x1x32xf32>
    %46 = vector.shape_cast %45 : vector<1x1x1x32xf32> to vector<1x32xf32>
    %c0_40 = arith.constant 0 : index
    %c0_41 = arith.constant 0 : index
    %47 = vector.load %arg9[%c0_40, %c0_41] : memref<48x32xf32, #tpu.memory_space<vmem>>, vector<24x32xf32>
    %48 = vector.extract_strided_slice %47 {offsets = [5, 0], sizes = [16, 32], strides = [1, 1]} : vector<24x32xf32> to vector<16x32xf32>
    %49 = vector.extract_strided_slice %47 {offsets = [6, 0], sizes = [16, 32], strides = [1, 1]} : vector<24x32xf32> to vector<16x32xf32>
    %50 = vector.extract_strided_slice %47 {offsets = [7, 0], sizes = [16, 32], strides = [1, 1]} : vector<24x32xf32> to vector<16x32xf32>
    %51 = vector.extract_strided_slice %47 {offsets = [8, 0], sizes = [16, 32], strides = [1, 1]} : vector<24x32xf32> to vector<16x32xf32>
    %52 = tpu.concatenate %48, %49, %50, %51 in 1 : vector<16x32xf32>, vector<16x32xf32>, vector<16x32xf32>, vector<16x32xf32> -> vector<16x128xf32>
    %c24_42 = arith.constant 24 : index
    %c0_43 = arith.constant 0 : index
    %53 = vector.load %arg9[%c24_42, %c0_43] : memref<48x32xf32, #tpu.memory_space<vmem>>, vector<24x32xf32>
    %54 = vector.extract_strided_slice %53 {offsets = [5, 0], sizes = [16, 32], strides = [1, 1]} : vector<24x32xf32> to vector<16x32xf32>
    %55 = vector.extract_strided_slice %53 {offsets = [6, 0], sizes = [16, 32], strides = [1, 1]} : vector<24x32xf32> to vector<16x32xf32>
    %56 = vector.extract_strided_slice %53 {offsets = [7, 0], sizes = [16, 32], strides = [1, 1]} : vector<24x32xf32> to vector<16x32xf32>
    %57 = vector.extract_strided_slice %53 {offsets = [8, 0], sizes = [16, 32], strides = [1, 1]} : vector<24x32xf32> to vector<16x32xf32>
    %58 = tpu.concatenate %54, %55, %56, %57 in 1 : vector<16x32xf32>, vector<16x32xf32>, vector<16x32xf32>, vector<16x32xf32> -> vector<16x128xf32>
    %59 = tpu.concatenate %52, %58 in 0 : vector<16x128xf32>, vector<16x128xf32> -> vector<32x128xf32>
    %cst_44 = arith.constant dense<0.000000e+00> : vector<32x32xf32>
    %60 = tpu.matmul %59, %44, %cst_44 {dimension_numbers = #tpu.dot_dimension_numbers<[1], [0], [0], [1], [0, 0, 1, 1], [], []>} : vector<32x128xf32>, vector<128x32xf32>, vector<32x32xf32> -> vector<32x32xf32>
    %61 = vector.broadcast %46 : vector<1x32xf32> to vector<32x32xf32>
    %62 = arith.addf %60, %61 : vector<32x32xf32>
    %cst_45 = arith.constant 0.000000e+00 : f32
    %63 = vector.broadcast %cst_45 : f32 to vector<32x32xf32>
    %64 = arith.maximumf %62, %63 : vector<32x32xf32>
    %65 = arith.addf %64, %12 : vector<32x32xf32>
    %cst_46 = arith.constant 0.000000e+00 : f32
    %66 = vector.broadcast %cst_46 : f32 to vector<32x32xf32>
    %67 = arith.maximumf %65, %66 : vector<32x32xf32>
    %68 = vector.extract_strided_slice %67 {offsets = [0, 0], sizes = [16, 32], strides = [1, 1]} : vector<32x32xf32> to vector<16x32xf32>
    %c8_47 = arith.constant 8 : index
    %c0_48 = arith.constant 0 : index
    %69 = vector.load %arg9[%c8_47, %c0_48] : memref<48x32xf32, #tpu.memory_space<vmem>>, vector<16x32xf32>
    tpu.vector_store %arg9[%c8_47, %c0_48], %68 {strides = array<i32>} : memref<48x32xf32, #tpu.memory_space<vmem>>, vector<16x32xf32>,
    %70 = vector.extract_strided_slice %67 {offsets = [16, 0], sizes = [16, 32], strides = [1, 1]} : vector<32x32xf32> to vector<16x32xf32>
    %c32_49 = arith.constant 32 : index
    %c0_50 = arith.constant 0 : index
    %71 = vector.load %arg9[%c32_49, %c0_50] : memref<48x32xf32, #tpu.memory_space<vmem>>, vector<16x32xf32>
    tpu.vector_store %arg9[%c32_49, %c0_50], %70 {strides = array<i32>} : memref<48x32xf32, #tpu.memory_space<vmem>>, vector<16x32xf32>,
    %c1_51 = arith.constant 1 : index
    %c0_52 = arith.constant 0 : index
    %c0_53 = arith.constant 0 : index
    %c0_54 = arith.constant 0 : index
    %72 = vector.load %arg4[%c1_51, %c0_52, %c0_53, %c0_54] : memref<2x2x128x32xf32, #tpu.memory_space<vmem>>, vector<1x1x128x32xf32>
    %73 = vector.shape_cast %72 : vector<1x1x128x32xf32> to vector<128x32xf32>
    %c1_55 = arith.constant 1 : index
    %c0_56 = arith.constant 0 : index
    %c0_57 = arith.constant 0 : index
    %c0_58 = arith.constant 0 : index
    %74 = vector.load %arg5[%c1_55, %c0_56, %c0_57, %c0_58] : memref<2x2x1x32xf32, #tpu.memory_space<vmem>>, vector<1x1x1x32xf32>
    %75 = vector.shape_cast %74 : vector<1x1x1x32xf32> to vector<1x32xf32>
    %c0_59 = arith.constant 0 : index
    %c0_60 = arith.constant 0 : index
    %76 = vector.load %arg9[%c0_59, %c0_60] : memref<48x32xf32, #tpu.memory_space<vmem>>, vector<24x32xf32>
    %77 = vector.extract_strided_slice %76 {offsets = [2, 0], sizes = [16, 32], strides = [1, 1]} : vector<24x32xf32> to vector<16x32xf32>
    %78 = vector.extract_strided_slice %76 {offsets = [4, 0], sizes = [16, 32], strides = [1, 1]} : vector<24x32xf32> to vector<16x32xf32>
    %79 = vector.extract_strided_slice %76 {offsets = [6, 0], sizes = [16, 32], strides = [1, 1]} : vector<24x32xf32> to vector<16x32xf32>
    %80 = vector.extract_strided_slice %76 {offsets = [8, 0], sizes = [16, 32], strides = [1, 1]} : vector<24x32xf32> to vector<16x32xf32>
    %81 = tpu.concatenate %77, %78, %79, %80 in 1 : vector<16x32xf32>, vector<16x32xf32>, vector<16x32xf32>, vector<16x32xf32> -> vector<16x128xf32>
    %c24_61 = arith.constant 24 : index
    %c0_62 = arith.constant 0 : index
    %82 = vector.load %arg9[%c24_61, %c0_62] : memref<48x32xf32, #tpu.memory_space<vmem>>, vector<24x32xf32>
    %83 = vector.extract_strided_slice %82 {offsets = [2, 0], sizes = [16, 32], strides = [1, 1]} : vector<24x32xf32> to vector<16x32xf32>
    %84 = vector.extract_strided_slice %82 {offsets = [4, 0], sizes = [16, 32], strides = [1, 1]} : vector<24x32xf32> to vector<16x32xf32>
    %85 = vector.extract_strided_slice %82 {offsets = [6, 0], sizes = [16, 32], strides = [1, 1]} : vector<24x32xf32> to vector<16x32xf32>
    %86 = vector.extract_strided_slice %82 {offsets = [8, 0], sizes = [16, 32], strides = [1, 1]} : vector<24x32xf32> to vector<16x32xf32>
    %87 = tpu.concatenate %83, %84, %85, %86 in 1 : vector<16x32xf32>, vector<16x32xf32>, vector<16x32xf32>, vector<16x32xf32> -> vector<16x128xf32>
    %88 = tpu.concatenate %81, %87 in 0 : vector<16x128xf32>, vector<16x128xf32> -> vector<32x128xf32>
    %cst_63 = arith.constant dense<0.000000e+00> : vector<32x32xf32>
    %89 = tpu.matmul %88, %73, %cst_63 {dimension_numbers = #tpu.dot_dimension_numbers<[1], [0], [0], [1], [0, 0, 1, 1], [], []>} : vector<32x128xf32>, vector<128x32xf32>, vector<32x32xf32> -> vector<32x32xf32>
    %90 = vector.broadcast %75 : vector<1x32xf32> to vector<32x32xf32>
    %91 = arith.addf %89, %90 : vector<32x32xf32>
    %cst_64 = arith.constant 0.000000e+00 : f32
    %92 = vector.broadcast %cst_64 : f32 to vector<32x32xf32>
    %93 = arith.maximumf %91, %92 : vector<32x32xf32>
    %94 = vector.extract_strided_slice %93 {offsets = [0, 0], sizes = [16, 32], strides = [1, 1]} : vector<32x32xf32> to vector<16x32xf32>
    %c8_65 = arith.constant 8 : index
    %c0_66 = arith.constant 0 : index
    %95 = vector.load %arg9[%c8_65, %c0_66] : memref<48x32xf32, #tpu.memory_space<vmem>>, vector<16x32xf32>
    tpu.vector_store %arg9[%c8_65, %c0_66], %94 {strides = array<i32>} : memref<48x32xf32, #tpu.memory_space<vmem>>, vector<16x32xf32>,
    %96 = vector.extract_strided_slice %93 {offsets = [16, 0], sizes = [16, 32], strides = [1, 1]} : vector<32x32xf32> to vector<16x32xf32>
    %c32_67 = arith.constant 32 : index
    %c0_68 = arith.constant 0 : index
    %97 = vector.load %arg9[%c32_67, %c0_68] : memref<48x32xf32, #tpu.memory_space<vmem>>, vector<16x32xf32>
    tpu.vector_store %arg9[%c32_67, %c0_68], %96 {strides = array<i32>} : memref<48x32xf32, #tpu.memory_space<vmem>>, vector<16x32xf32>,
    %c1_69 = arith.constant 1 : index
    %c1_70 = arith.constant 1 : index
    %c0_71 = arith.constant 0 : index
    %c0_72 = arith.constant 0 : index
    %98 = vector.load %arg4[%c1_69, %c1_70, %c0_71, %c0_72] : memref<2x2x128x32xf32, #tpu.memory_space<vmem>>, vector<1x1x128x32xf32>
    %99 = vector.shape_cast %98 : vector<1x1x128x32xf32> to vector<128x32xf32>
    %c1_73 = arith.constant 1 : index
    %c1_74 = arith.constant 1 : index
    %c0_75 = arith.constant 0 : index
    %c0_76 = arith.constant 0 : index
    %100 = vector.load %arg5[%c1_73, %c1_74, %c0_75, %c0_76] : memref<2x2x1x32xf32, #tpu.memory_space<vmem>>, vector<1x1x1x32xf32>
    %101 = vector.shape_cast %100 : vector<1x1x1x32xf32> to vector<1x32xf32>
    %c0_77 = arith.constant 0 : index
    %c0_78 = arith.constant 0 : index
    %102 = vector.load %arg9[%c0_77, %c0_78] : memref<48x32xf32, #tpu.memory_space<vmem>>, vector<24x32xf32>
    %103 = vector.extract_strided_slice %102 {offsets = [2, 0], sizes = [16, 32], strides = [1, 1]} : vector<24x32xf32> to vector<16x32xf32>
    %104 = vector.extract_strided_slice %102 {offsets = [4, 0], sizes = [16, 32], strides = [1, 1]} : vector<24x32xf32> to vector<16x32xf32>
    %105 = vector.extract_strided_slice %102 {offsets = [6, 0], sizes = [16, 32], strides = [1, 1]} : vector<24x32xf32> to vector<16x32xf32>
    %106 = vector.extract_strided_slice %102 {offsets = [8, 0], sizes = [16, 32], strides = [1, 1]} : vector<24x32xf32> to vector<16x32xf32>
    %107 = tpu.concatenate %103, %104, %105, %106 in 1 : vector<16x32xf32>, vector<16x32xf32>, vector<16x32xf32>, vector<16x32xf32> -> vector<16x128xf32>
    %c24_79 = arith.constant 24 : index
    %c0_80 = arith.constant 0 : index
    %108 = vector.load %arg9[%c24_79, %c0_80] : memref<48x32xf32, #tpu.memory_space<vmem>>, vector<24x32xf32>
    %109 = vector.extract_strided_slice %108 {offsets = [2, 0], sizes = [16, 32], strides = [1, 1]} : vector<24x32xf32> to vector<16x32xf32>
    %110 = vector.extract_strided_slice %108 {offsets = [4, 0], sizes = [16, 32], strides = [1, 1]} : vector<24x32xf32> to vector<16x32xf32>
    %111 = vector.extract_strided_slice %108 {offsets = [6, 0], sizes = [16, 32], strides = [1, 1]} : vector<24x32xf32> to vector<16x32xf32>
    %112 = vector.extract_strided_slice %108 {offsets = [8, 0], sizes = [16, 32], strides = [1, 1]} : vector<24x32xf32> to vector<16x32xf32>
    %113 = tpu.concatenate %109, %110, %111, %112 in 1 : vector<16x32xf32>, vector<16x32xf32>, vector<16x32xf32>, vector<16x32xf32> -> vector<16x128xf32>
    %114 = tpu.concatenate %107, %113 in 0 : vector<16x128xf32>, vector<16x128xf32> -> vector<32x128xf32>
    %cst_81 = arith.constant dense<0.000000e+00> : vector<32x32xf32>
    %115 = tpu.matmul %114, %99, %cst_81 {dimension_numbers = #tpu.dot_dimension_numbers<[1], [0], [0], [1], [0, 0, 1, 1], [], []>} : vector<32x128xf32>, vector<128x32xf32>, vector<32x32xf32> -> vector<32x32xf32>
    %116 = vector.broadcast %101 : vector<1x32xf32> to vector<32x32xf32>
    %117 = arith.addf %115, %116 : vector<32x32xf32>
    %cst_82 = arith.constant 0.000000e+00 : f32
    %118 = vector.broadcast %cst_82 : f32 to vector<32x32xf32>
    %119 = arith.maximumf %117, %118 : vector<32x32xf32>
    %120 = arith.addf %119, %67 : vector<32x32xf32>
    %cst_83 = arith.constant 0.000000e+00 : f32
    %121 = vector.broadcast %cst_83 : f32 to vector<32x32xf32>
    %122 = arith.maximumf %120, %121 : vector<32x32xf32>
    %123 = vector.extract_strided_slice %122 {offsets = [12, 0], sizes = [4, 32], strides = [1, 1]} : vector<32x32xf32> to vector<4x32xf32>
    %124 = vector.extract_strided_slice %122 {offsets = [28, 0], sizes = [4, 32], strides = [1, 1]} : vector<32x32xf32> to vector<4x32xf32>
    %125 = tpu.concatenate %123, %124 in 0 : vector<4x32xf32>, vector<4x32xf32> -> vector<8x32xf32>
    %c0_84 = arith.constant 0 : index
    %c0_85 = arith.constant 0 : index
    %126 = vector.load %arg6[%c0_84, %c0_85] : memref<32x7xf32, #tpu.memory_space<vmem>>, vector<32x7xf32>
    %cst_86 = arith.constant dense<0.000000e+00> : vector<8x7xf32>
    %127 = tpu.matmul %125, %126, %cst_86 {dimension_numbers = #tpu.dot_dimension_numbers<[1], [0], [0], [1], [0, 0, 1, 1], [], []>} : vector<8x32xf32>, vector<32x7xf32>, vector<8x7xf32> -> vector<8x7xf32>
    %c0_87 = arith.constant 0 : index
    %c0_88 = arith.constant 0 : index
    %128 = vector.load %arg7[%c0_87, %c0_88] : memref<1x7xf32, #tpu.memory_space<vmem>>, vector<1x7xf32>
    %129 = vector.broadcast %128 : vector<1x7xf32> to vector<8x7xf32>
    %130 = arith.addf %127, %129 : vector<8x7xf32>
    %131 = vector.extract_strided_slice %130 {offsets = [0, 0], sizes = [4, 7], strides = [1, 1]} : vector<8x7xf32> to vector<4x7xf32>
    %c0_89 = arith.constant 0 : index
    %c0_90 = arith.constant 0 : index
    %c0_91 = arith.constant 0 : index
    %132 = vector.load %arg8[%c0_89, %c0_90, %c0_91] : memref<2x4x7xf32, #tpu.memory_space<vmem>>, vector<1x4x7xf32>
    %133 = vector.shape_cast %132 : vector<1x4x7xf32> to vector<4x7xf32>
    %134 = vector.shape_cast %131 : vector<4x7xf32> to vector<1x4x7xf32>
    tpu.vector_store %arg8[%c0_89, %c0_90, %c0_91], %134 {strides = array<i32>} : memref<2x4x7xf32, #tpu.memory_space<vmem>>, vector<1x4x7xf32>,
    %135 = vector.extract_strided_slice %130 {offsets = [4, 0], sizes = [4, 7], strides = [1, 1]} : vector<8x7xf32> to vector<4x7xf32>
    %c1_92 = arith.constant 1 : index
    %c0_93 = arith.constant 0 : index
    %c0_94 = arith.constant 0 : index
    %136 = vector.load %arg8[%c1_92, %c0_93, %c0_94] : memref<2x4x7xf32, #tpu.memory_space<vmem>>, vector<1x4x7xf32>
    %137 = vector.shape_cast %136 : vector<1x4x7xf32> to vector<4x7xf32>
    %138 = vector.shape_cast %135 : vector<4x7xf32> to vector<1x4x7xf32>
    tpu.vector_store %arg8[%c1_92, %c0_93, %c0_94], %138 {strides = array<i32>} : memref<2x4x7xf32, #tpu.memory_space<vmem>>, vector<1x4x7xf32>,
    return
  }
  func.func @transform_0(%arg0: i32) -> (i32, i32, i32) {
    %c0_i32 = arith.constant 0 : i32
    %c0_i32_0 = arith.constant 0 : i32
    %c0_i32_1 = arith.constant 0 : i32
    %c0_i32_2 = arith.constant 0 : i32
    return %c0_i32, %c0_i32_0, %c0_i32_1 : i32, i32, i32
  }
  func.func @transform_1(%arg0: i32) -> (i32, i32) {
    %c0_i32 = arith.constant 0 : i32
    %c0_i32_0 = arith.constant 0 : i32
    %c0_i32_1 = arith.constant 0 : i32
    return %c0_i32, %c0_i32_0 : i32, i32
  }
  func.func @transform_2(%arg0: i32) -> (i32, i32) {
    %c0_i32 = arith.constant 0 : i32
    %c0_i32_0 = arith.constant 0 : i32
    %c0_i32_1 = arith.constant 0 : i32
    return %c0_i32, %c0_i32_0 : i32, i32
  }
  func.func @transform_3(%arg0: i32) -> (i32, i32, i32, i32) {
    %c0_i32 = arith.constant 0 : i32
    %c0_i32_0 = arith.constant 0 : i32
    %c0_i32_1 = arith.constant 0 : i32
    %c0_i32_2 = arith.constant 0 : i32
    %c0_i32_3 = arith.constant 0 : i32
    return %c0_i32, %c0_i32_0, %c0_i32_1, %c0_i32_2 : i32, i32, i32, i32
  }
  func.func @transform_4(%arg0: i32) -> (i32, i32, i32, i32) {
    %c0_i32 = arith.constant 0 : i32
    %c0_i32_0 = arith.constant 0 : i32
    %c0_i32_1 = arith.constant 0 : i32
    %c0_i32_2 = arith.constant 0 : i32
    %c0_i32_3 = arith.constant 0 : i32
    return %c0_i32, %c0_i32_0, %c0_i32_1, %c0_i32_2 : i32, i32, i32, i32
  }
  func.func @transform_5(%arg0: i32) -> (i32, i32) {
    %c0_i32 = arith.constant 0 : i32
    %c0_i32_0 = arith.constant 0 : i32
    %c0_i32_1 = arith.constant 0 : i32
    return %c0_i32, %c0_i32_0 : i32, i32
  }
  func.func @transform_6(%arg0: i32) -> (i32, i32) {
    %c0_i32 = arith.constant 0 : i32
    %c0_i32_0 = arith.constant 0 : i32
    %c0_i32_1 = arith.constant 0 : i32
    return %c0_i32, %c0_i32_0 : i32, i32
  }
  func.func @transform_7(%arg0: i32) -> (i32, i32, i32) {
    %c0_i32 = arith.constant 0 : i32
    %c0_i32_0 = arith.constant 0 : i32
    %c0_i32_1 = arith.constant 0 : i32
    %c0_i32_2 = arith.constant 0 : i32
    return %c0_i32, %c0_i32_0, %c0_i32_1 : i32, i32, i32
  }
}

</mosaic_0001>

<bundles_post_ra>
// kernel: tpu_custom_call.1
= control target key start
LH: loop header
LB: loop body
LE: loop exit
PB: predicated region body
PF: predicated region fallthrough
CT: control target
= control target key end

     0   :  { %vm56_vm0 = vcmask 1046528   ;;  %vm43_vm1 = vcmask 56320   ;;  %s2446_s0 = inlined_call_operand.vmem [shape: f32[2,16,7], index: 0, kind: input, shape index: {}]   ;;  %s2447_s1 = inlined_call_operand.vmem [shape: f32[7,32], index: 1, kind: input, shape index: {}]   ;;  %s2448_s2 = inlined_call_operand.vmem [shape: f32[1,32], index: 2, kind: input, shape index: {}]   ;;  %s2449_s3 = inlined_call_operand.vmem [shape: f32[2,2,128,32], index: 3, kind: input, shape index: {}]   ;;  %s2450_s4 = inlined_call_operand.vmem [shape: f32[2,2,1,32], index: 4, kind: input, shape index: {}]   ;;  %s2451_s5 = inlined_call_operand.vmem [shape: f32[32,7], index: 5, kind: input, shape index: {}]   ;;  %s2452_s6 = inlined_call_operand.vmem [shape: f32[1,7], index: 6, kind: input, shape index: {}]   ;;  %s2453_s7 = inlined_call_operand.hbm [shape: f32[2,4,7], index: 7, kind: output, shape index: {}]  }
   0x1   :  { %v35_v0 = vld [vmem:[%s2447_s1] sm:$0x7f]  ;;  %v31_v2 = vld [vmem:[%s2446_s0 + $0x8] sm:$0xff]  ;;  %v1259_v3 = vld [vmem:[%s2446_s0 + $0x10] sm:$0xff] }
   0x2   :  { %v30_v1 = vld [vmem:[%s2446_s0] sm:$0xff]  ;;  %1414 = vmatprep.subr.msk.mxu0 %vm56_vm0, %v35_v0 }
   0x3   :  { %1416 = vmatprep.mubr.msk.f32.mxu0 %vm43_vm1, %v30_v1 }
   0x4   :  { %12 = vsyncpa [#allocation4], 0  ;;  %1415 = vmatpush3.msk.msra.mxu0 %vm56_vm0, %v35_v0  ;;  %v1260_v4 = vld [vmem:[%s2446_s0 + $0x18] sm:$0xff]  ;;  %vm27_vm2 = vcmask 261120   ;;  %v1794_v5 = vmov 0.0   ;;  %v163_v7 = vld [vmem:[%s2449_s3 + $0x70] sm:$0xff] }
   0x5   :  { %1417 = vmatmul.mubr.msk.f32.vlgmr.msra.gmra.mxu0 %vm43_vm1, %v31_v2  ;;  %28 = vst.msk [vmem:[#allocation2] sm:$0xff] %vm27_vm2, %v1794_v5  ;;  %29 = vst.msk [vmem:[#allocation2 + $0x18] sm:$0xff] %vm27_vm2, %v1794_v5  ;;  %v164_v6 = vld [vmem:[%s2449_s3 + $0x78] sm:$0xff]  ;;  %v162_v8 = vld [vmem:[%s2449_s3 + $0x68] sm:$0xff]  ;;  %vm186_vm3 = vcmask 1045504   ;;  %vm201_vm4 = vcmask 1044480  }
   0x6   :  { %1419 = vmatprep.mubr.msk.f32.mxu0 %vm43_vm1, %v1259_v3  ;;  %1422 = vmatprep.subr.mxu1 %v164_v6  ;;  %v161_v9 = vld [vmem:[%s2449_s3 + $0x60] sm:$0xff]  ;;  %v160_v10 = vld [vmem:[%s2449_s3 + $0x58] sm:$0xff]  ;;  %v159_v11 = vld [vmem:[%s2449_s3 + $0x50] sm:$0xff]  ;;  %s1795_s15 = smov 64   ;;  %s1796_s16 = smov 32   ;;  %vm217_vm5 = vcmask 523264  }
   0x7   :  { %1423 = vmatpush3.msra.mxu1 %v164_v6  ;;  %v158_v12 = vld [vmem:[%s2449_s3 + $0x48] sm:$0xff]  ;;  %v157_v13 = vld [vmem:[%s2449_s3 + $0x40] sm:$0xff]  ;;  %v156_v21 = vld [vmem:[%s2449_s3 + $0x38] sm:$0xff]  ;;  %s1797_s19 = smov 96   ;;  %vm221_vm6 = vcmask 785408   ;;  %vm283_vm7 = vcmask 1042432  }
   0x8   :  { %1424 = vmatprep.subr.mxu1 %v163_v7  ;;  %v1261_v14 = vld [vmem:[%s2448_s2] ss:$0 sm:$0xff]  ;;  %v155_v24 = vld [vmem:[%s2449_s3 + $0x30] sm:$0xff]  ;;  %v154_v26 = vld [vmem:[%s2449_s3 + $0x28] sm:$0xff]  ;;  %vm695_vm8 = vcmask 1043456   ;;  %vm710_vm9 = vcmask 1041408  }
   0x9   :  { %1420 = vmatmul.mubr.msk.f32.gmra.mxu0 %vm43_vm1, %v1260_v4  ;;  %1425 = vmatpush3.msra.mxu1 %v163_v7  ;;  %v153_v27 = vld [vmem:[%s2449_s3 + $0x20] sm:$0xff]  ;;  %v152_v38 = vld [vmem:[%s2449_s3 + $0x18] sm:$0xff]  ;;  %v151_v44 = vld [vmem:[%s2449_s3 + $0x10] sm:$0xff]  ;;  %vm1798_vm10 = vmmov 0   ;;  %s1799_s12 = smov [#allocation3]   ;;  %vm1238_vm11 = vcmask 52224  }
   0xa   :  { %1426 = vmatprep.subr.mxu1 %v162_v8  ;;  %v150_v54 = vld [vmem:[%s2449_s3 + $0x8] sm:$0xff]  ;;  %v149_v57 = vld [vmem:[%s2449_s3] sm:$0xff]  ;;  %s1248_s13 = sshll.u32 %s1799_s12, 4  ;;  %vm1241_vm12 = vcmask 56324   ;;  %s1249_s13 = int_to_ptr.vmem [resolvable:$true] %s1248_s13 }
   0xb   :  { %1427 = vmatpush3.msra.mxu1 %v162_v8  ;;  %s1772_s0 = scalar_lea.vmem %s1249_s13, 128  ;;  %p1777_p1 = scmp.lt.s32.totalorder %s1249_s13, %s1249_s13 }
   0xc   :  { %1428 = vmatprep.subr.mxu1 %v161_v9  ;;  %v1909_v25 = vld [vmem:[#allocation2] sm:$0xff]  ;;  %v1932_v37 = vld [vmem:[#allocation2 + $0x18] sm:$0xff]  ;;  %p1773_p0 = scmp.ne.s32.totalorder %s1249_s13, %s1772_s0  ;;  %p1778_p2 = scmp.lt.s32.totalorder %s1772_s0, %s1772_s0 }
   0xd   :  { %1429 = vmatpush3.msra.mxu1 %v161_v9  ;;  %v1922_v29 = vrot.slane %v1909_v25, 2  ;;  %v172_v30 = vrot.slane %v1909_v25, 1  ;;  %v1951_v48 = vrot.slane %v1932_v37, 2  ;;  %v231_v49 = vrot.slane %v1932_v37, 1 }
   0xe   :  { %1430 = vmatprep.subr.mxu1 %v160_v10  ;;  %p1779_p3 = por %p1778_p2, %p1777_p1 }
   0xf   :  { %1431 = vmatpush3.msra.mxu1 %v160_v10 }
  0x10   :  { %1432 = vmatprep.subr.mxu1 %v159_v11  ;;  %p1780_p4 = pnand %p1779_p3, %p1773_p0 }
  0x11   :  { %1433 = vmatpush3.msra.mxu1 %v159_v11 }
  0x12   :  { %1434 = vmatprep.subr.mxu1 %v158_v12 }
  0x13   :  { %1435 = vmatpush3.msra.mxu1 %v158_v12 }
  0x14   :  { %1436 = vmatprep.subr.mxu1 %v157_v13 }
  0x15   :  { %1437 = vmatpush3.msra.mxu1 %v157_v13 }
  0x16   :  { %1438 = vmatprep.subr.mxu1 %v156_v21 }
  0x17   :  { %1439 = vmatpush3.msra.mxu1 %v156_v21 }
  0x18   :  { %1440 = vmatprep.subr.mxu1 %v155_v24 }
  0x19   :  { %1441 = vmatpush3.msra.mxu1 %v155_v24 }
  0x1a   :  { %1442 = vmatprep.subr.mxu1 %v154_v26 }
  0x1b   :  { %1443 = vmatpush3.msra.mxu1 %v154_v26 }
  0x1c   :  { %1444 = vmatprep.subr.mxu1 %v153_v27 }
  0x1d   :  { %1445 = vmatpush3.msra.mxu1 %v153_v27 }
  0x1e   :  { %1446 = vmatprep.subr.mxu1 %v152_v38 }
  0x1f   :  { %1447 = vmatpush3.msra.mxu1 %v152_v38 }
  0x20   :  { %1448 = vmatprep.subr.mxu1 %v151_v44 }
  0x21   :  { %1449 = vmatpush3.msra.mxu1 %v151_v44 }
  0x22   :  { %1450 = vmatprep.subr.mxu1 %v150_v54 }
  0x23   :  { %1451 = vmatpush3.msra.mxu1 %v150_v54 }
  0x24   :  { %1452 = vmatprep.subr.mxu1 %v149_v57 }
  0x25   :  { %1453 = vmatpush3.msra.mxu1 %v149_v57 }
  0xc5   :  { %v1418_v15 = vpop.f32.mrf.mxu0 }
  0xc6   :  { %v1889_v16 = vadd.f32 %v1418_v15, %v1261_v14 }
  0xc7   :  { %v126_v17 = vpop.f32.mrf.mxu0 }
  0xc8   :  { %146 = vst.msk [vmem:[#allocation2 + $0x10] sm:$0xff] %vm27_vm2, %v1889_v16  ;;  %v1893_v18 = vadd.f32 %v1261_v14, %v126_v17 }
  0xc9   :  { %v1421_v19 = vpop.f32.mrf.mxu0 }
  0xca   :  { %145 = vst.msk [vmem:[#allocation2 + $0x8] sm:$0xff] %vm27_vm2, %v1893_v18  ;;  %v1897_v20 = vadd.f32 %v1421_v19, %v1261_v14 }
  0xcb   :  { %v136_v22 = vpop.f32.mrf.mxu0 }
  0xcc   :  { %148 = vst.msk [vmem:[#allocation2 + $0x28] sm:$0xff] %vm27_vm2, %v1897_v20  ;;  %v1904_v23 = vadd.f32 %v1261_v14, %v136_v22 }
  0xce   :  { %147 = vst.msk [vmem:[#allocation2 + $0x20] sm:$0xff] %vm27_vm2, %v1904_v23 }
  0xcf   :  { %v1919_v28 = vld [vmem:[#allocation2 + $0x10] sm:$0xff] }
  0xd0   :  { %v190_v32 = vrot.slane %v1919_v28, 2  ;;  %v175_v35 = vrot.slane %v1919_v28, 1  ;;  %v203_v39 = vrot.slane %v1919_v28, 3 }
  0xd1   :  { %v1925_v31 = vld [vmem:[#allocation2 + $0x8] sm:$0xff] }
  0xd2   :  { %v188_v33 = vrot.slane %v1925_v31, 2  ;;  %v173_v34 = vrot.slane %v1925_v31, 1  ;;  %v202_v36 = vrot.slane %v1925_v31, 3 }
  0xd3   :  { %v1963_v55 = vld [vmem:[#allocation2 + $0x28] sm:$0xff] }
  0xd4   :  { %v189_v40 = vsel %vm186_vm3, %v1922_v29, %v188_v33  ;;  %v191_v41 = vsel %vm186_vm3, %v188_v33, %v190_v32  ;;  %v174_v42 = vsel %vm56_vm0, %v172_v30, %v173_v34  ;;  %v176_v43 = vsel %vm56_vm0, %v173_v34, %v175_v35 }
  0xd5   :  { %v1597_v45 = vpack.i.bf16 %v191_v41, %v189_v40  ;;  %v1592_v46 = vpack.i.bf16 %v176_v43, %v174_v42  ;;  %v1948_v47 = vld [vmem:[#allocation2 + $0x20] sm:$0xff]  ;;  %v204_v51 = vsel %vm201_vm4, %v202_v36, %v203_v39  ;;  %v248_v61 = vrot.slane %v1963_v55, 2 }
  0xd6   :  { %v259_v50 = vrot.slane %v1948_v47, 3  ;;  %v246_v52 = vrot.slane %v1948_v47, 2  ;;  %v232_v53 = vrot.slane %v1948_v47, 1  ;;  %v1602_v58 = vpack.i.bf16 %v204_v51, %v202_v36 }
  0xd7   :  { %1598 = vrot.lane.b32.xlu1 %v1597_v45, %s1795_s15  ;;  %1593 = vrot.lane.b32.xlu0 %v1592_v46, %s1796_s16  ;;  %v234_v62 = vrot.slane %v1963_v55, 1  ;;  %v260_v3 = vrot.slane %v1963_v55, 3 }
  0xd8   :  { %v1607_v56 = vpack.i.bf16 %v259_v50, %v203_v39  ;;  %v247_v59 = vsel %vm186_vm3, %v1951_v48, %v246_v52  ;;  %v233_v60 = vsel %vm56_vm0, %v231_v49, %v232_v53  ;;  %v249_v1 = vsel %vm186_vm3, %v246_v52, %v248_v61 }
  0xd9   :  { %v1617_v63 = vpack.i.bf16 %v247_v59, %v190_v32  ;;  %v1612_v0 = vpack.i.bf16 %v233_v60, %v175_v35  ;;  %v235_v2 = vsel %vm56_vm0, %v232_v53, %v234_v62  ;;  %v1627_v4 = vpack.i.bf16 %v248_v61, %v249_v1 }
  0xda   :  { %v1622_v6 = vpack.i.bf16 %v234_v62, %v235_v2  ;;  %v261_v7 = vsel %vm201_vm4, %v259_v50, %v260_v3 }
  0xdb   :  { %1608 = vrot.lane.b32.xlu1 %v1607_v56, %s1797_s19  ;;  %1603 = vrot.lane.b32.xlu0 %v1602_v58, %s1797_s19  ;;  %v1632_v8 = vpack.i.bf16 %v260_v3, %v261_v7 }
  0xdf   :  { %1618 = vrot.lane.b32.xlu1 %v1617_v63, %s1795_s15  ;;  %1613 = vrot.lane.b32.xlu0 %v1612_v0, %s1796_s16 }
  0xe3   :  { %1628 = vrot.lane.b32.xlu1 %v1627_v4, %s1795_s15  ;;  %1623 = vrot.lane.b32.xlu0 %v1622_v6, %s1796_s16 }
  0xe7   :  { %1633 = vrot.lane.b32.xlu0 %v1632_v8, %s1797_s19 }
 0x149   :  { %v1599_v9 = vpop.permute.xlu1 %1598  ;;  %v1594_v10 = vpop.permute.xlu0 %1593 }
 0x14a   :  { %v1596_v11 = vunpack.i.h.bf16 %v1594_v10  ;;  %v1595_v12 = vunpack.i.l.bf16 %v1594_v10  ;;  %v1601_v13 = vunpack.i.h.bf16 %v1599_v9  ;;  %v1600_v14 = vunpack.i.l.bf16 %v1599_v9 }
 0x14c   :  { %v215_v15 = vsel %vm27_vm2, %v1925_v31, %v1596_v11  ;;  %v214_v17 = vsel %vm27_vm2, %v1909_v25, %v1595_v12  ;;  %v1283_v11 = vld [vmem:[%s2449_s3 + $0xf8] sm:$0xff]  ;;  %v1282_v12 = vld [vmem:[%s2449_s3 + $0xf0] sm:$0xff] }
 0x14d   :  { %v1609_v19 = vpop.permute.xlu1 %1608  ;;  %v1604_v21 = vpop.permute.xlu0 %1603  ;;  %v218_v26 = vsel %vm217_vm5, %v214_v17, %v1600_v14  ;;  %v219_v27 = vsel %vm217_vm5, %v215_v15, %v1601_v13  ;;  %1460 = vmatprep.subr.mxu0 %v1283_v11  ;;  %v1281_v13 = vld [vmem:[%s2449_s3 + $0xe8] sm:$0xff]  ;;  %v1280_v14 = vld [vmem:[%s2449_s3 + $0xe0] sm:$0xff]  ;;  %v1279_v15 = vld [vmem:[%s2449_s3 + $0xd8] sm:$0xff] }
 0x14e   :  { %v1606_v22 = vunpack.i.h.bf16 %v1604_v21  ;;  %v1605_v24 = vunpack.i.l.bf16 %v1604_v21  ;;  %v1610_v45 = vunpack.i.l.bf16 %v1609_v19  ;;  %v1611_v59 = vunpack.i.h.bf16 %v1609_v19  ;;  %1461 = vmatpush3.msra.mxu0 %v1283_v11  ;;  %v1278_v17 = vld [vmem:[%s2449_s3 + $0xd0] sm:$0xff]  ;;  %v1267_v19 = vld [vmem:[%s2450_s4] ss:$0 sm:$0xff] }
 0x14f   :  { %1462 = vmatprep.subr.mxu0 %v1282_v12 }
 0x150   :  { %v222_v32 = vsel %vm221_vm6, %v218_v26, %v1605_v24  ;;  %v223_v33 = vsel %vm221_vm6, %v219_v27, %v1606_v22  ;;  %1463 = vmatpush3.msra.mxu0 %v1282_v12 }
 0x151   :  { %v1619_v34 = vpop.permute.xlu1 %1618  ;;  %v1614_v31 = vpop.permute.xlu0 %1613  ;;  %v284_v35 = vrot.slane %v222_v32, 5  ;;  %v285_v36 = vrot.slane %v223_v33, 5  ;;  %1464 = vmatprep.subr.mxu0 %v1281_v13 }
 0x152   :  { %v1620_v38 = vunpack.i.l.bf16 %v1619_v34  ;;  %v1616_v39 = vunpack.i.h.bf16 %v1614_v31  ;;  %v1615_v40 = vunpack.i.l.bf16 %v1614_v31  ;;  %v1621_v41 = vunpack.i.h.bf16 %v1619_v34  ;;  %1465 = vmatpush3.msra.mxu0 %v1281_v13 }
 0x153   :  { %v286_v42 = vsel %vm283_vm7, %v284_v35, %v285_v36  ;;  %1466 = vmatprep.subr.mxu0 %v1280_v14  ;;  %v1277_v35 = vld [vmem:[%s2449_s3 + $0xc8] sm:$0xff] }
 0x154   :  { %v271_v43 = vsel %vm27_vm2, %v1932_v37, %v1616_v39  ;;  %v216_v44 = vsel %vm27_vm2, %v1919_v28, %v1615_v40  ;;  %1454 = vmatprep.mubr.f32.mxu1 %v286_v42  ;;  %1467 = vmatpush3.msra.mxu0 %v1280_v14  ;;  %v1276_v39 = vld [vmem:[%s2449_s3 + $0xc0] sm:$0xff]  ;;  %v1275_v42 = vld [vmem:[%s2449_s3 + $0xb8] sm:$0xff] }
 0x155   :  { %v220_v46 = vsel %vm217_vm5, %v216_v44, %v1620_v38  ;;  %v1629_v50 = vpop.permute.xlu1 %1628  ;;  %v1624_v51 = vpop.permute.xlu0 %1623  ;;  %v274_v54 = vsel %vm217_vm5, %v271_v43, %v1621_v41  ;;  %1468 = vmatprep.subr.mxu0 %v1279_v15  ;;  %v1274_v43 = vld [vmem:[%s2449_s3 + $0xb0] sm:$0xff] }
 0x156   :  { %v1626_v52 = vunpack.i.h.bf16 %v1624_v51  ;;  %v1625_v53 = vunpack.i.l.bf16 %v1624_v51  ;;  %v1631_v56 = vunpack.i.h.bf16 %v1629_v50  ;;  %v1630_v57 = vunpack.i.l.bf16 %v1629_v50  ;;  %1469 = vmatpush3.msra.mxu0 %v1279_v15  ;;  %v1273_v51 = vld [vmem:[%s2449_s3 + $0xa8] sm:$0xff] }
 0x157   :  { %v224_v58 = vsel %vm221_vm6, %v220_v46, %v1610_v45  ;;  %v277_v2 = vsel %vm221_vm6, %v274_v54, %v1611_v59  ;;  %1470 = vmatprep.subr.mxu0 %v1278_v17 }
 0x158   :  { %v273_v60 = vsel %vm27_vm2, %v1963_v55, %v1626_v52  ;;  %v272_v28 = vsel %vm27_vm2, %v1948_v47, %v1625_v53  ;;  %v287_v61 = vrot.slane %v224_v58, 5  ;;  %v294_v7 = vrot.slane %v277_v2, 5  ;;  %1471 = vmatpush3.msra.mxu0 %v1278_v17  ;;  %v1270_v2 = vld [vmem:[%s2449_s3 + $0x90] sm:$0xff] }
 0x159   :  { %v1634_v62 = vpop.permute.xlu0 %1633  ;;  %v275_v3 = vsel %vm217_vm5, %v272_v28, %v1630_v57  ;;  %v276_v4 = vsel %vm217_vm5, %v273_v60, %v1631_v56  ;;  %1472 = vmatprep.subr.mxu0 %v1277_v35  ;;  %v1272_v57 = vld [vmem:[%s2449_s3 + $0xa0] sm:$0xff]  ;;  %v1271_v28 = vld [vmem:[%s2449_s3 + $0x98] sm:$0xff] }
 0x15a   :  { %v1636_v63 = vunpack.i.h.bf16 %v1634_v62  ;;  %v1635_v0 = vunpack.i.l.bf16 %v1634_v62  ;;  %v288_v1 = vsel %vm283_vm7, %v285_v36, %v287_v61  ;;  %1473 = vmatpush3.msra.mxu0 %v1277_v35 }
 0x15b   :  { %1455 = vmatmul.mubr.f32.vlgmr.msra.gmra.mxu1 %v288_v1  ;;  %1474 = vmatprep.subr.mxu0 %v1276_v39 }
 0x15c   :  { %v278_v6 = vsel %vm221_vm6, %v275_v3, %v1635_v0  ;;  %v279_v55 = vsel %vm221_vm6, %v276_v4, %v1636_v63  ;;  %1475 = vmatpush3.msra.mxu0 %v1276_v39 }
 0x15d   :  { %v295_v8 = vrot.slane %v278_v6, 5  ;;  %v297_v47 = vrot.slane %v279_v55, 5  ;;  %1476 = vmatprep.subr.mxu0 %v1275_v42 }
 0x15e   :  { %1477 = vmatpush3.msra.mxu0 %v1275_v42 }
 0x15f   :  { %v296_v9 = vsel %vm283_vm7, %v294_v7, %v295_v8  ;;  %v298_v10 = vsel %vm283_vm7, %v295_v8, %v297_v47  ;;  %1478 = vmatprep.subr.mxu0 %v1274_v43  ;;  %v1269_v7 = vld [vmem:[%s2449_s3 + $0x88] sm:$0xff] }
 0x160   :  { %1457 = vmatprep.mubr.f32.mxu1 %v296_v9  ;;  %1479 = vmatpush3.msra.mxu0 %v1274_v43  ;;  %v1268_v9 = vld [vmem:[%s2449_s3 + $0x80] sm:$0xff] }
 0x161   :  { %1458 = vmatmul.mubr.f32.gmra.mxu1 %v298_v10  ;;  %1480 = vmatprep.subr.mxu0 %v1273_v51 }
 0x162   :  { %1481 = vmatpush3.msra.mxu0 %v1273_v51 }
 0x163   :  { %1482 = vmatprep.subr.mxu0 %v1272_v57 }
 0x164   :  { %1483 = vmatpush3.msra.mxu0 %v1272_v57 }
 0x165   :  { %1484 = vmatprep.subr.mxu0 %v1271_v28 }
 0x166   :  { %1485 = vmatpush3.msra.mxu0 %v1271_v28 }
 0x167   :  { %1486 = vmatprep.subr.mxu0 %v1270_v2 }
 0x168   :  { %1487 = vmatpush3.msra.mxu0 %v1270_v2 }
 0x169   :  { %1488 = vmatprep.subr.mxu0 %v1269_v7 }
 0x16a   :  { %1489 = vmatpush3.msra.mxu0 %v1269_v7 }
 0x16b   :  { %1490 = vmatprep.subr.mxu0 %v1268_v9 }
 0x16c   :  { %1491 = vmatpush3.msra.mxu0 %v1268_v9 }
 0x21b   :  { %v1456_v21 = vpop.f32.mrf.mxu1 }
 0x21c   :  { %v379_v22 = vadd.f32 %v1456_v21, %v1267_v19 }
 0x21d   :  { %v373_v24 = vpop.f32.mrf.mxu1 }
 0x21e   :  { %v393_v26 = vmax.f32 %v379_v22, 0.0  ;;  %v374_v27 = vadd.f32 %v1267_v19, %v373_v24 }
 0x220   :  { %397 = vst.msk [vmem:[#allocation2 + $0x10] sm:$0xff] %vm27_vm2, %v393_v26  ;;  %v392_v32 = vmax.f32 %v374_v27, 0.0 }
 0x221   :  { %v1459_v33 = vpop.f32.mrf.mxu1 }
 0x222   :  { %396 = vst.msk [vmem:[#allocation2 + $0x8] sm:$0xff] %vm27_vm2, %v392_v32  ;;  %v389_v34 = vadd.f32 %v1459_v33, %v1267_v19 }
 0x223   :  { %v383_v31 = vpop.f32.mrf.mxu1 }
 0x224   :  { %v395_v36 = vmax.f32 %v389_v34, 0.0  ;;  %v384_v38 = vadd.f32 %v1267_v19, %v383_v31 }
 0x226   :  { %399 = vst.msk [vmem:[#allocation2 + $0x28] sm:$0xff] %vm27_vm2, %v395_v36  ;;  %v394_v40 = vmax.f32 %v384_v38, 0.0 }
 0x227   :  { %v2044_v41 = vld [vmem:[#allocation2 + $0x10] sm:$0xff] }
 0x228   :  { %398 = vst.msk [vmem:[#allocation2 + $0x20] sm:$0xff] %vm27_vm2, %v394_v40  ;;  %v428_v46 = vrot.slane %v2044_v41, 1  ;;  %v442_v54 = vrot.slane %v2044_v41, 2  ;;  %v454_v61 = vrot.slane %v2044_v41, 3 }
 0x229   :  { %v2053_v44 = vld [vmem:[#allocation2 + $0x8] sm:$0xff] }
 0x22a   :  { %v426_v45 = vrot.slane %v2053_v44, 1  ;;  %v440_v50 = vrot.slane %v2053_v44, 2  ;;  %v453_v60 = vrot.slane %v2053_v44, 3 }
 0x22c   :  { %v427_v52 = vsel %vm56_vm0, %v172_v30, %v426_v45  ;;  %v429_v53 = vsel %vm56_vm0, %v426_v45, %v428_v46  ;;  %v441_v58 = vsel %vm186_vm3, %v1922_v29, %v440_v50  ;;  %v443_v59 = vsel %vm186_vm3, %v440_v50, %v442_v54 }
 0x22d   :  { %v1637_v56 = vpack.i.bf16 %v429_v53, %v427_v52  ;;  %v1642_v0 = vpack.i.bf16 %v443_v59, %v441_v58  ;;  %v2082_v1 = vld [vmem:[#allocation2 + $0x28] sm:$0xff]  ;;  %v455_v4 = vsel %vm201_vm4, %v453_v60, %v454_v61 }
 0x22e   :  { %v483_v8 = vrot.slane %v2082_v1, 1  ;;  %v1647_v47 = vpack.i.bf16 %v455_v4, %v453_v60  ;;  %v509_v12 = vrot.slane %v2082_v1, 3  ;;  %v497_v14 = vrot.slane %v2082_v1, 2 }
 0x22f   :  { %1638 = vrot.lane.b32.xlu1 %v1637_v56, %s1796_s16  ;;  %v2074_v30 = vld [vmem:[#allocation2 + $0x20] sm:$0xff] }
 0x230   :  { %v508_v62 = vrot.slane %v2074_v30, 3  ;;  %v481_v63 = vrot.slane %v2074_v30, 1  ;;  %v495_v55 = vrot.slane %v2074_v30, 2 }
 0x232   :  { %v1652_v3 = vpack.i.bf16 %v508_v62, %v454_v61  ;;  %v482_v6 = vsel %vm56_vm0, %v231_v49, %v481_v63  ;;  %v484_v49 = vsel %vm56_vm0, %v481_v63, %v483_v8  ;;  %v496_v11 = vsel %vm186_vm3, %v1951_v48, %v495_v55 }
 0x233   :  { %1643 = vrot.lane.b32.xlu1 %v1642_v0, %s1795_s15  ;;  %v1657_v10 = vpack.i.bf16 %v482_v6, %v428_v46  ;;  %v1667_v13 = vpack.i.bf16 %v483_v8, %v484_v49  ;;  %v1662_v15 = vpack.i.bf16 %v496_v11, %v442_v54  ;;  %v510_v17 = vsel %vm201_vm4, %v508_v62, %v509_v12 }
 0x234   :  { %1653 = vrot.lane.b32.xlu0 %v1652_v3, %s1797_s19  ;;  %v498_v19 = vsel %vm186_vm3, %v495_v55, %v497_v14  ;;  %v1677_v21 = vpack.i.bf16 %v509_v12, %v510_v17 }
 0x235   :  { %v1672_v22 = vpack.i.bf16 %v497_v14, %v498_v19 }
 0x237   :  { %1648 = vrot.lane.b32.xlu1 %v1647_v47, %s1797_s19 }
 0x238   :  { %1658 = vrot.lane.b32.xlu0 %v1657_v10, %s1796_s16 }
 0x23b   :  { %1668 = vrot.lane.b32.xlu1 %v1667_v13, %s1796_s16 }
 0x23c   :  { %1663 = vrot.lane.b32.xlu0 %v1662_v15, %s1795_s15 }
 0x23f   :  { %1678 = vrot.lane.b32.xlu1 %v1677_v21, %s1797_s19 }
 0x240   :  { %1673 = vrot.lane.b32.xlu0 %v1672_v22, %s1795_s15 }
 0x2a1   :  { %v1639_v24 = vpop.permute.xlu1 %1638 }
 0x2a2   :  { %v1641_v27 = vunpack.i.h.bf16 %v1639_v24  ;;  %v1640_v32 = vunpack.i.l.bf16 %v1639_v24  ;;  %v1301_v24 = vld [vmem:[%s2449_s3 + $0x178] sm:$0xff] }
 0x2a3   :  { %1498 = vmatprep.subr.mxu1 %v1301_v24 }
 0x2a4   :  { %v466_v36 = vsel %vm27_vm2, %v2053_v44, %v1641_v27  ;;  %v465_v38 = vsel %vm27_vm2, %v1909_v25, %v1640_v32  ;;  %1499 = vmatpush3.msra.mxu1 %v1301_v24  ;;  %v1299_v27 = vld [vmem:[%s2449_s3 + $0x168] sm:$0xff]  ;;  %v1298_v32 = vld [vmem:[%s2449_s3 + $0x160] sm:$0xff] }
 0x2a5   :  { %v1644_v26 = vpop.permute.xlu1 %1643 }
 0x2a6   :  { %v1654_v33 = vpop.permute.xlu0 %1653  ;;  %v1646_v34 = vunpack.i.h.bf16 %v1644_v26  ;;  %v1645_v31 = vunpack.i.l.bf16 %v1644_v26  ;;  %v1300_v26 = vld [vmem:[%s2449_s3 + $0x170] sm:$0xff] }
 0x2a7   :  { %v1655_v28 = vunpack.i.l.bf16 %v1654_v33  ;;  %v1656_v4 = vunpack.i.h.bf16 %v1654_v33  ;;  %1500 = vmatprep.subr.mxu1 %v1300_v26  ;;  %v1297_v33 = vld [vmem:[%s2449_s3 + $0x158] sm:$0xff] }
 0x2a8   :  { %v468_v43 = vsel %vm217_vm5, %v465_v38, %v1645_v31  ;;  %v469_v45 = vsel %vm217_vm5, %v466_v36, %v1646_v34  ;;  %1501 = vmatpush3.msra.mxu1 %v1300_v26  ;;  %v1296_v34 = vld [vmem:[%s2449_s3 + $0x150] sm:$0xff]  ;;  %v1295_v31 = vld [vmem:[%s2449_s3 + $0x148] sm:$0xff] }
 0x2a9   :  { %v1649_v35 = vpop.permute.xlu1 %1648  ;;  %1502 = vmatprep.subr.mxu1 %v1299_v27 }
 0x2aa   :  { %v1651_v39 = vunpack.i.h.bf16 %v1649_v35  ;;  %v1650_v40 = vunpack.i.l.bf16 %v1649_v35  ;;  %v1659_v42 = vpop.permute.xlu0 %1658  ;;  %1503 = vmatpush3.msra.mxu1 %v1299_v27  ;;  %v1285_v35 = vld [vmem:[%s2450_s4 + $0x1] ss:$0 sm:$0xff] }
 0x2ab   :  { %v1661_v51 = vunpack.i.h.bf16 %v1659_v42  ;;  %v1660_v52 = vunpack.i.l.bf16 %v1659_v42  ;;  %1504 = vmatprep.subr.mxu1 %v1298_v32 }
 0x2ac   :  { %v471_v46 = vsel %vm221_vm6, %v468_v43, %v1650_v40  ;;  %v472_v50 = vsel %vm221_vm6, %v469_v45, %v1651_v39  ;;  %1505 = vmatpush3.msra.mxu1 %v1298_v32 }
 0x2ad   :  { %v1669_v53 = vpop.permute.xlu1 %1668  ;;  %v532_v54 = vrot.slane %v471_v46, 5  ;;  %v533_v56 = vrot.slane %v472_v50, 5  ;;  %v520_v61 = vsel %vm27_vm2, %v1932_v37, %v1661_v51  ;;  %v467_v62 = vsel %vm27_vm2, %v2044_v41, %v1660_v52  ;;  %1506 = vmatprep.subr.mxu1 %v1297_v33 }
 0x2ae   :  { %v1664_v44 = vpop.permute.xlu0 %1663  ;;  %v1671_v57 = vunpack.i.h.bf16 %v1669_v53  ;;  %v1670_v63 = vunpack.i.l.bf16 %v1669_v53  ;;  %1507 = vmatpush3.msra.mxu1 %v1297_v33 }
 0x2af   :  { %v1666_v58 = vunpack.i.h.bf16 %v1664_v44  ;;  %v1665_v59 = vunpack.i.l.bf16 %v1664_v44  ;;  %v534_v60 = vsel %vm283_vm7, %v532_v54, %v533_v56  ;;  %1508 = vmatprep.subr.mxu1 %v1296_v34 }
 0x2b0   :  { %1492 = vmatprep.mubr.f32.mxu0 %v534_v60  ;;  %v522_v7 = vsel %vm27_vm2, %v2082_v1, %v1671_v57  ;;  %v521_v41 = vsel %vm27_vm2, %v2074_v30, %v1670_v63  ;;  %1509 = vmatpush3.msra.mxu1 %v1296_v34  ;;  %v1293_v60 = vld [vmem:[%s2449_s3 + $0x138] sm:$0xff] }
 0x2b1   :  { %v470_v0 = vsel %vm217_vm5, %v467_v62, %v1665_v59  ;;  %v523_v2 = vsel %vm217_vm5, %v520_v61, %v1666_v58  ;;  %v1679_v3 = vpop.permute.xlu1 %1678  ;;  %1510 = vmatprep.subr.mxu1 %v1295_v31  ;;  %v1291_v61 = vld [vmem:[%s2449_s3 + $0x128] sm:$0xff] }
 0x2b2   :  { %v473_v6 = vsel %vm221_vm6, %v470_v0, %v1655_v28  ;;  %v1674_v55 = vpop.permute.xlu0 %1673  ;;  %v1681_v10 = vunpack.i.h.bf16 %v1679_v3  ;;  %v1680_v49 = vunpack.i.l.bf16 %v1679_v3  ;;  %v526_v11 = vsel %vm221_vm6, %v523_v2, %v1656_v4  ;;  %1511 = vmatpush3.msra.mxu1 %v1295_v31 }
 0x2b3   :  { %v535_v8 = vrot.slane %v473_v6, 5  ;;  %v1676_v47 = vunpack.i.h.bf16 %v1674_v55  ;;  %v1675_v9 = vunpack.i.l.bf16 %v1674_v55  ;;  %v542_v17 = vrot.slane %v526_v11, 5 }
 0x2b4   :  { %v696_v2 = vrot.slane %v1909_v25, 4 }
 0x2b5   :  { %v524_v12 = vsel %vm217_vm5, %v521_v41, %v1675_v9  ;;  %v525_v13 = vsel %vm217_vm5, %v522_v7, %v1676_v47  ;;  %v536_v14 = vsel %vm283_vm7, %v533_v56, %v535_v8  ;;  %v1290_v7 = vld [vmem:[%s2449_s3 + $0x120] sm:$0xff]  ;;  %v1289_v8 = vld [vmem:[%s2449_s3 + $0x118] sm:$0xff] }
 0x2b6   :  { %1493 = vmatmul.mubr.f32.vlgmr.msra.gmra.mxu0 %v536_v14  ;;  %v527_v15 = vsel %vm221_vm6, %v524_v12, %v1680_v49  ;;  %v528_v1 = vsel %vm221_vm6, %v525_v13, %v1681_v10  ;;  %v1288_v13 = vld [vmem:[%s2449_s3 + $0x110] sm:$0xff] }
 0x2b7   :  { %v543_v19 = vrot.slane %v527_v15, 5  ;;  %v545_v21 = vrot.slane %v528_v1, 5 }
 0x2b9   :  { %v544_v30 = vsel %vm283_vm7, %v542_v17, %v543_v19  ;;  %v546_v22 = vsel %vm283_vm7, %v543_v19, %v545_v21  ;;  %v752_v21 = vrot.slane %v1932_v37, 4 }
 0x2ba   :  { %1495 = vmatprep.mubr.f32.mxu0 %v544_v30 }
 0x2bb   :  { %1496 = vmatmul.mubr.f32.gmra.mxu0 %v546_v22  ;;  %v1287_v22 = vld [vmem:[%s2449_s3 + $0x108] sm:$0xff] }
 0x376   :  { %v1494_v36 = vpop.f32.mrf.mxu0 }
 0x377   :  { %v627_v38 = vadd.f32 %v1494_v36, %v1285_v35 }
 0x378   :  { %v621_v39 = vpop.f32.mrf.mxu0 }
 0x379   :  { %v641_v40 = vmax.f32 %v627_v38, 0.0  ;;  %v622_v42 = vadd.f32 %v1285_v35, %v621_v39 }
 0x37b   :  { %v2167_v43 = vadd.f32 %v641_v40, %v1889_v16  ;;  %v640_v45 = vmax.f32 %v622_v42, 0.0  ;;  %v1497_v46 = vpop.f32.mrf.mxu0 }
 0x37c   :  { %v637_v50 = vadd.f32 %v1497_v46, %v1285_v35 }
 0x37d   :  { %v649_v51 = vmax.f32 %v2167_v43, 0.0  ;;  %v644_v52 = vadd.f32 %v640_v45, %v1893_v18  ;;  %v631_v53 = vpop.f32.mrf.mxu0  ;;  %v1294_v18 = vld [vmem:[%s2449_s3 + $0x140] sm:$0xff] }
 0x37e   :  { %v643_v54 = vmax.f32 %v637_v50, 0.0  ;;  %v632_v56 = vadd.f32 %v1285_v35, %v631_v53  ;;  %1512 = vmatprep.subr.mxu1 %v1294_v18 }
 0x37f   :  { %653 = vst.msk [vmem:[#allocation2 + $0x10] sm:$0xff] %vm27_vm2, %v649_v51  ;;  %v648_v44 = vmax.f32 %v644_v52, 0.0  ;;  %1513 = vmatpush3.msra.mxu1 %v1294_v18 }
 0x380   :  { %v2175_v57 = vadd.f32 %v643_v54, %v1897_v20  ;;  %v642_v16 = vmax.f32 %v632_v56, 0.0  ;;  %1514 = vmatprep.subr.mxu1 %v1293_v60 }
 0x381   :  { %652 = vst.msk [vmem:[#allocation2 + $0x8] sm:$0xff] %vm27_vm2, %v648_v44  ;;  %1515 = vmatpush3.msra.mxu1 %v1293_v60 }
 0x382   :  { %v651_v58 = vmax.f32 %v2175_v57, 0.0  ;;  %v646_v59 = vadd.f32 %v642_v16, %v1904_v23  ;;  %v1292_v23 = vld [vmem:[%s2449_s3 + $0x130] sm:$0xff] }
 0x383   :  { %1516 = vmatprep.subr.mxu1 %v1292_v23 }
 0x384   :  { %655 = vst.msk [vmem:[#allocation2 + $0x28] sm:$0xff] %vm27_vm2, %v651_v58  ;;  %v650_v20 = vmax.f32 %v646_v59, 0.0  ;;  %1517 = vmatpush3.msra.mxu1 %v1292_v23 }
 0x385   :  { %1518 = vmatprep.subr.mxu1 %v1291_v61 }
 0x386   :  { %654 = vst.msk [vmem:[#allocation2 + $0x20] sm:$0xff] %vm27_vm2, %v650_v20  ;;  %v2190_v28 = vld [vmem:[#allocation2 + $0x10] sm:$0xff]  ;;  %1519 = vmatpush3.msra.mxu1 %v1291_v61 }
 0x387   :  { %v684_v0 = vrot.slane %v2190_v28, 2  ;;  %v699_v55 = vrot.slane %v2190_v28, 4  ;;  %1520 = vmatprep.subr.mxu1 %v1290_v7  ;;  %v712_v49 = vrot.slane %v2190_v28, 6 }
 0x388   :  { %v2198_v62 = vld [vmem:[#allocation2 + $0x8] sm:$0xff]  ;;  %1521 = vmatpush3.msra.mxu1 %v1290_v7 }
 0x389   :  { %v682_v63 = vrot.slane %v2198_v62, 2  ;;  %v697_v3 = vrot.slane %v2198_v62, 4  ;;  %v711_v10 = vrot.slane %v2198_v62, 6  ;;  %1522 = vmatprep.subr.mxu1 %v1289_v8 }
 0x38a   :  { %1523 = vmatpush3.msra.mxu1 %v1289_v8 }
 0x38b   :  { %v683_v4 = vsel %vm186_vm3, %v1922_v29, %v682_v63  ;;  %v685_v6 = vsel %vm186_vm3, %v682_v63, %v684_v0  ;;  %v698_v41 = vsel %vm695_vm8, %v696_v2, %v697_v3  ;;  %v700_v29 = vsel %vm695_vm8, %v697_v3, %v699_v55  ;;  %v2226_v1 = vld [vmem:[#allocation2 + $0x28] sm:$0xff]  ;;  %1524 = vmatprep.subr.mxu1 %v1288_v13 }
 0x38c   :  { %v1682_v47 = vpack.i.bf16 %v685_v6, %v683_v4  ;;  %v1687_v15 = vpack.i.bf16 %v700_v29, %v698_v41  ;;  %v713_v19 = vsel %vm710_vm9, %v711_v10, %v712_v49  ;;  %1525 = vmatpush3.msra.mxu1 %v1288_v13  ;;  %v741_v24 = vrot.slane %v2226_v1, 2 }
 0x38d   :  { %v2214_v9 = vld [vmem:[#allocation2 + $0x20] sm:$0xff]  ;;  %1526 = vmatprep.subr.mxu1 %v1287_v22  ;;  %v1692_v27 = vpack.i.bf16 %v713_v19, %v711_v10  ;;  %v755_v34 = vrot.slane %v2226_v1, 4  ;;  %v767_v31 = vrot.slane %v2226_v1, 6 }
 0x38e   :  { %1683 = vrot.lane.b32.xlu0 %v1682_v47, %s1796_s16  ;;  %v766_v11 = vrot.slane %v2214_v9, 6  ;;  %v739_v12 = vrot.slane %v2214_v9, 2  ;;  %v753_v30 = vrot.slane %v2214_v9, 4  ;;  %1527 = vmatpush3.msra.mxu1 %v1287_v22 }
 0x390   :  { %v1697_v14 = vpack.i.bf16 %v766_v11, %v712_v49  ;;  %v740_v17 = vsel %vm186_vm3, %v1951_v48, %v739_v12  ;;  %v1286_v48 = vld [vmem:[%s2449_s3 + $0x100] sm:$0xff]  ;;  %v754_v32 = vsel %vm695_vm8, %v752_v21, %v753_v30  ;;  %v742_v33 = vsel %vm186_vm3, %v739_v12, %v741_v24 }
 0x391   :  { %v1702_v26 = vpack.i.bf16 %v740_v17, %v684_v0  ;;  %1528 = vmatprep.subr.mxu1 %v1286_v48  ;;  %v1707_v35 = vpack.i.bf16 %v754_v32, %v699_v55  ;;  %v1712_v36 = vpack.i.bf16 %v741_v24, %v742_v33  ;;  %v756_v38 = vsel %vm695_vm8, %v753_v30, %v755_v34 }
 0x392   :  { %1698 = vrot.lane.b32.xlu1 %v1697_v14, %s1797_s19  ;;  %1688 = vrot.lane.b32.xlu0 %v1687_v15, %s1795_s15  ;;  %v768_v39 = vsel %vm710_vm9, %v766_v11, %v767_v31  ;;  %v1717_v40 = vpack.i.bf16 %v755_v34, %v756_v38  ;;  %v1319_v38 = vld [vmem:[%s2449_s3 + $0x1f8] sm:$0xff] }
 0x393   :  { %1529 = vmatpush3.msra.mxu1 %v1286_v48  ;;  %v1722_v42 = vpack.i.bf16 %v767_v31, %v768_v39  ;;  %v1318_v39 = vld [vmem:[%s2449_s3 + $0x1f0] sm:$0xff]  ;;  %1536 = vmatprep.subr.mxu0 %v1319_v38 }
 0x394   :  { %1574 = vmatprep.subr.mxu1 %v1794_v5  ;;  %1537 = vmatpush3.msra.mxu0 %v1319_v38 }
 0x395   :  { %1538 = vmatprep.subr.mxu0 %v1318_v39 }
 0x396   :  { %1703 = vrot.lane.b32.xlu1 %v1702_v26, %s1796_s16  ;;  %1693 = vrot.lane.b32.xlu0 %v1692_v27, %s1797_s19 }
 0x397   :  { %1539 = vmatpush3.msra.mxu0 %v1318_v39 }
 0x39a   :  { %1708 = vrot.lane.b32.xlu1 %v1707_v35, %s1795_s15  ;;  %1713 = vrot.lane.b32.xlu0 %v1712_v36, %s1796_s16 }
 0x39e   :  { %1718 = vrot.lane.b32.xlu1 %v1717_v40, %s1795_s15  ;;  %1723 = vrot.lane.b32.xlu0 %v1722_v42, %s1797_s19  ;;  %v1317_v40 = vld [vmem:[%s2449_s3 + $0x1e8] sm:$0xff]  ;;  %v1316_v42 = vld [vmem:[%s2449_s3 + $0x1e0] sm:$0xff] }
 0x39f   :  { %1540 = vmatprep.subr.mxu0 %v1317_v40 }
 0x3a0   :  { %1541 = vmatpush3.msra.mxu0 %v1317_v40 }
 0x3a1   :  { %1542 = vmatprep.subr.mxu0 %v1316_v42 }
 0x3a2   :  { %1543 = vmatpush3.msra.mxu0 %v1316_v42 }
 0x400   :  { %v1684_v45 = vpop.permute.xlu0 %1683 }
 0x401   :  { %v1686_v46 = vunpack.i.h.bf16 %v1684_v45  ;;  %v1685_v53 = vunpack.i.l.bf16 %v1684_v45  ;;  %v1315_v45 = vld [vmem:[%s2449_s3 + $0x1d8] sm:$0xff] }
 0x402   :  { %1544 = vmatprep.subr.mxu0 %v1315_v45 }
 0x403   :  { %v724_v44 = vsel %vm27_vm2, %v2198_v62, %v1686_v46  ;;  %v723_v18 = vsel %vm27_vm2, %v1909_v25, %v1685_v53  ;;  %v1314_v46 = vld [vmem:[%s2449_s3 + $0x1d0] sm:$0xff]  ;;  %1545 = vmatpush3.msra.mxu0 %v1315_v45 }
 0x404   :  { %v1699_v50 = vpop.permute.xlu1 %1698  ;;  %v1689_v52 = vpop.permute.xlu0 %1688  ;;  %1546 = vmatprep.subr.mxu0 %v1314_v46 }
 0x405   :  { %v1691_v54 = vunpack.i.h.bf16 %v1689_v52  ;;  %v1690_v56 = vunpack.i.l.bf16 %v1689_v52  ;;  %v1700_v7 = vunpack.i.l.bf16 %v1699_v50  ;;  %v1701_v13 = vunpack.i.h.bf16 %v1699_v50  ;;  %v1313_v50 = vld [vmem:[%s2449_s3 + $0x1c8] sm:$0xff]  ;;  %1547 = vmatpush3.msra.mxu0 %v1314_v46  ;;  %v1303_v52 = vld [vmem:[%s2450_s4 + $0x2] ss:$0 sm:$0xff] }
 0x406   :  { %1548 = vmatprep.subr.mxu0 %v1313_v50 }
 0x407   :  { %v726_v61 = vsel %vm217_vm5, %v723_v18, %v1690_v56  ;;  %v727_v63 = vsel %vm217_vm5, %v724_v44, %v1691_v54  ;;  %1549 = vmatpush3.msra.mxu0 %v1313_v50 }
 0x408   :  { %v1704_v16 = vpop.permute.xlu1 %1703  ;;  %v1694_v59 = vpop.permute.xlu0 %1693 }
 0x409   :  { %v1706_v60 = vunpack.i.h.bf16 %v1704_v16  ;;  %v1696_v20 = vunpack.i.h.bf16 %v1694_v59  ;;  %v1695_v23 = vunpack.i.l.bf16 %v1694_v59  ;;  %v1705_v0 = vunpack.i.l.bf16 %v1704_v16 }
 0x40b   :  { %v729_v2 = vsel %vm221_vm6, %v726_v61, %v1695_v23  ;;  %v730_v3 = vsel %vm221_vm6, %v727_v63, %v1696_v20  ;;  %v778_v25 = vsel %vm27_vm2, %v1932_v37, %v1706_v60  ;;  %v725_v41 = vsel %vm27_vm2, %v2190_v28, %v1705_v0  ;;  %v1312_v63 = vld [vmem:[%s2449_s3 + $0x1c0] sm:$0xff]  ;;  %v1311_v0 = vld [vmem:[%s2449_s3 + $0x1b8] sm:$0xff] }
 0x40c   :  { %v1709_v4 = vpop.permute.xlu1 %1708  ;;  %v1714_v6 = vpop.permute.xlu0 %1713  ;;  %v790_v62 = vrot.slane %v729_v2, 2  ;;  %v791_v55 = vrot.slane %v730_v3, 2  ;;  %v2316_v3 = vld [vmem:[#allocation2] sm:$0xff]  ;;  %1550 = vmatprep.subr.mxu0 %v1312_v63 }
 0x40d   :  { %v1711_v8 = vunpack.i.h.bf16 %v1709_v4  ;;  %v1710_v47 = vunpack.i.l.bf16 %v1709_v4  ;;  %v1716_v29 = vunpack.i.h.bf16 %v1714_v6  ;;  %v1715_v10 = vunpack.i.l.bf16 %v1714_v6  ;;  %1551 = vmatpush3.msra.mxu0 %v1312_v63 }
 0x40e   :  { %v792_v49 = vsel %vm186_vm3, %v790_v62, %v791_v55  ;;  %1552 = vmatprep.subr.mxu0 %v1311_v0  ;;  %v931_v6 = vrot.slane %v2316_v3, 2  ;;  %v1310_v62 = vld [vmem:[%s2449_s3 + $0x1b0] sm:$0xff] }
 0x40f   :  { %v728_v11 = vsel %vm217_vm5, %v725_v41, %v1710_v47  ;;  %v781_v12 = vsel %vm217_vm5, %v778_v25, %v1711_v8  ;;  %1530 = vmatprep.mubr.f32.mxu1 %v792_v49  ;;  %v780_v28 = vsel %vm27_vm2, %v2226_v1, %v1716_v29  ;;  %v779_v22 = vsel %vm27_vm2, %v2214_v9, %v1715_v10  ;;  %v2334_v29 = vld [vmem:[#allocation2 + $0x18] sm:$0xff] }
 0x410   :  { %v731_v14 = vsel %vm221_vm6, %v728_v11, %v1700_v7  ;;  %v1719_v15 = vpop.permute.xlu1 %1718  ;;  %v1724_v17 = vpop.permute.xlu0 %1723  ;;  %v784_v48 = vsel %vm221_vm6, %v781_v12, %v1701_v13  ;;  %1553 = vmatpush3.msra.mxu0 %v1311_v0  ;;  %v945_v47 = vrot.slane %v2316_v3, 4  ;;  %v1308_v12 = vld [vmem:[%s2449_s3 + $0x1a0] sm:$0xff]  ;;  %v1307_v13 = vld [vmem:[%s2449_s3 + $0x198] sm:$0xff] }
 0x411   :  { %v793_v37 = vrot.slane %v731_v14, 2  ;;  %v1721_v19 = vunpack.i.h.bf16 %v1719_v15  ;;  %v1720_v21 = vunpack.i.l.bf16 %v1719_v15  ;;  %v1726_v30 = vunpack.i.h.bf16 %v1724_v17  ;;  %1554 = vmatprep.subr.mxu0 %v1310_v62 }
 0x412   :  { %v1725_v24 = vunpack.i.l.bf16 %v1724_v17  ;;  %v800_v31 = vrot.slane %v784_v48, 2  ;;  %1555 = vmatpush3.msra.mxu0 %v1310_v62 }
 0x413   :  { %v782_v26 = vsel %vm217_vm5, %v779_v22, %v1720_v21  ;;  %v783_v27 = vsel %vm217_vm5, %v780_v28, %v1721_v19  ;;  %v794_v32 = vsel %vm186_vm3, %v791_v55, %v793_v37  ;;  %v1309_v55 = vld [vmem:[%s2449_s3 + $0x1a8] sm:$0xff]  ;;  %v986_v19 = vrot.slane %v2334_v29, 2 }
 0x414   :  { %v785_v33 = vsel %vm221_vm6, %v782_v26, %v1725_v24  ;;  %v786_v34 = vsel %vm221_vm6, %v783_v27, %v1726_v30  ;;  %1531 = vmatmul.mubr.f32.vlgmr.msra.gmra.mxu1 %v794_v32  ;;  %1556 = vmatprep.subr.mxu0 %v1309_v55  ;;  %v1306_v24 = vld [vmem:[%s2449_s3 + $0x190] sm:$0xff] }
 0x415   :  { %v801_v35 = vrot.slane %v785_v33, 2  ;;  %v803_v1 = vrot.slane %v786_v34, 2  ;;  %1557 = vmatpush3.msra.mxu0 %v1309_v55  ;;  %v1000_v34 = vrot.slane %v2334_v29, 4 }
 0x416   :  { %1558 = vmatprep.subr.mxu0 %v1308_v12 }
 0x417   :  { %v802_v36 = vsel %vm186_vm3, %v800_v31, %v801_v35  ;;  %v804_v9 = vsel %vm186_vm3, %v801_v35, %v803_v1  ;;  %1559 = vmatpush3.msra.mxu0 %v1308_v12  ;;  %v1305_v35 = vld [vmem:[%s2449_s3 + $0x188] sm:$0xff] }
 0x418   :  { %1533 = vmatprep.mubr.f32.mxu1 %v802_v36  ;;  %1560 = vmatprep.subr.mxu0 %v1307_v13  ;;  %v1304_v36 = vld [vmem:[%s2449_s3 + $0x180] sm:$0xff] }
 0x419   :  { %1534 = vmatmul.mubr.f32.gmra.mxu1 %v804_v9  ;;  %1561 = vmatpush3.msra.mxu0 %v1307_v13 }
 0x41a   :  { %1562 = vmatprep.subr.mxu0 %v1306_v24  ;;  %1582 = vmatprep.mubr.msk.f32.mxu1 %vm1798_vm10, %v1794_v5 }
 0x41b   :  { %1563 = vmatpush3.msra.mxu0 %v1306_v24 }
 0x41c   :  { %1564 = vmatprep.subr.mxu0 %v1305_v35 }
 0x41d   :  { %1565 = vmatpush3.msra.mxu0 %v1305_v35 }
 0x41e   :  { %1566 = vmatprep.subr.mxu0 %v1304_v36 }
 0x41f   :  { %1567 = vmatpush3.msra.mxu0 %v1304_v36 }
 0x4d4   :  { %v1532_v53 = vpop.f32.mrf.mxu1 }
 0x4d5   :  { %v885_v54 = vadd.f32 %v1532_v53, %v1303_v52 }
 0x4d6   :  { %v879_v56 = vpop.f32.mrf.mxu1 }
 0x4d7   :  { %v899_v44 = vmax.f32 %v885_v54, 0.0  ;;  %v880_v16 = vadd.f32 %v1303_v52, %v879_v56 }
 0x4d9   :  { %903 = vst.msk [vmem:[#allocation2 + $0x10] sm:$0xff] %vm27_vm2, %v899_v44  ;;  %v898_v59 = vmax.f32 %v880_v16, 0.0  ;;  %v1535_v18 = vpop.f32.mrf.mxu1 }
 0x4da   :  { %v895_v60 = vadd.f32 %v1535_v18, %v1303_v52 }
 0x4db   :  { %902 = vst.msk [vmem:[#allocation2 + $0x8] sm:$0xff] %vm27_vm2, %v898_v59  ;;  %v889_v20 = vpop.f32.mrf.mxu1 }
 0x4dc   :  { %v901_v23 = vmax.f32 %v895_v60, 0.0  ;;  %v890_v61 = vadd.f32 %v1303_v52, %v889_v20 }
 0x4de   :  { %905 = vst.msk [vmem:[#allocation2 + $0x28] sm:$0xff] %vm27_vm2, %v901_v23  ;;  %v900_v2 = vmax.f32 %v890_v61, 0.0 }
 0x4e0   :  { %904 = vst.msk [vmem:[#allocation2 + $0x20] sm:$0xff] %vm27_vm2, %v900_v2  ;;  %v2319_v4 = vld [vmem:[#allocation2 + $0x10] sm:$0xff] }
 0x4e1   :  { %v934_v8 = vrot.slane %v2319_v4, 2  ;;  %v948_v11 = vrot.slane %v2319_v4, 4  ;;  %v960_v30 = vrot.slane %v2319_v4, 6 }
 0x4e2   :  { %v2328_v7 = vld [vmem:[#allocation2 + $0x8] sm:$0xff] }
 0x4e3   :  { %v932_v25 = vrot.slane %v2328_v7, 2  ;;  %v946_v41 = vrot.slane %v2328_v7, 4  ;;  %v959_v21 = vrot.slane %v2328_v7, 6 }
 0x4e5   :  { %v933_v10 = vsel %vm186_vm3, %v931_v6, %v932_v25  ;;  %v935_v49 = vsel %vm186_vm3, %v932_v25, %v934_v8  ;;  %v947_v17 = vsel %vm695_vm8, %v945_v47, %v946_v41  ;;  %v949_v37 = vsel %vm695_vm8, %v946_v41, %v948_v11  ;;  %v2358_v27 = vld [vmem:[#allocation2 + $0x28] sm:$0xff] }
 0x4e6   :  { %v1727_v14 = vpack.i.bf16 %v935_v49, %v933_v10  ;;  %v1732_v26 = vpack.i.bf16 %v949_v37, %v947_v17  ;;  %v961_v33 = vsel %vm710_vm9, %v959_v21, %v960_v30  ;;  %v989_v1 = vrot.slane %v2358_v27, 2 }
 0x4e7   :  { %v2345_v15 = vld [vmem:[#allocation2 + $0x20] sm:$0xff]  ;;  %v1737_v38 = vpack.i.bf16 %v961_v33, %v959_v21  ;;  %v1003_v42 = vrot.slane %v2358_v27, 4  ;;  %v1015_v45 = vrot.slane %v2358_v27, 6 }
 0x4e8   :  { %1728 = vrot.lane.b32.xlu1 %v1727_v14, %s1796_s16  ;;  %v1014_v28 = vrot.slane %v2345_v15, 6  ;;  %v987_v22 = vrot.slane %v2345_v15, 2  ;;  %v1001_v31 = vrot.slane %v2345_v15, 4 }
 0x4ea   :  { %v1742_v48 = vpack.i.bf16 %v1014_v28, %v960_v30  ;;  %v988_v32 = vsel %vm186_vm3, %v986_v19, %v987_v22  ;;  %v1002_v39 = vsel %vm695_vm8, %v1000_v34, %v1001_v31  ;;  %v990_v40 = vsel %vm186_vm3, %v987_v22, %v989_v1 }
 0x4eb   :  { %v1747_v9 = vpack.i.bf16 %v988_v32, %v934_v8  ;;  %v1752_v46 = vpack.i.bf16 %v1002_v39, %v948_v11  ;;  %v1757_v50 = vpack.i.bf16 %v989_v1, %v990_v40  ;;  %v1004_v52 = vsel %vm695_vm8, %v1001_v31, %v1003_v42 }
 0x4ec   :  { %1743 = vrot.lane.b32.xlu0 %v1742_v48, %s1797_s19  ;;  %1733 = vrot.lane.b32.xlu1 %v1732_v26, %s1795_s15  ;;  %v1016_v53 = vsel %vm710_vm9, %v1014_v28, %v1015_v45  ;;  %v1762_v54 = vpack.i.bf16 %v1003_v42, %v1004_v52  ;;  %v1157_v52 = vld [vmem:[%s2451_s5 + $0x18] sm:$0xff] }
 0x4ed   :  { %v1767_v56 = vpack.i.bf16 %v1015_v45, %v1016_v53  ;;  %1575 = vmatpush3.msra.mxu1 %v1157_v52  ;;  %v1156_v53 = vld [vmem:[%s2451_s5 + $0x10] sm:$0xff] }
 0x4ee   :  { %1576 = vmatprep.subr.mxu1 %v1794_v5 }
 0x4ef   :  { %1577 = vmatpush3.msra.mxu1 %v1156_v53 }
 0x4f0   :  { %1748 = vrot.lane.b32.xlu0 %v1747_v9, %s1796_s16  ;;  %1738 = vrot.lane.b32.xlu1 %v1737_v38, %s1797_s19 }
 0x4f1   :  { %1578 = vmatprep.subr.mxu1 %v1794_v5 }
 0x4f4   :  { %1753 = vrot.lane.b32.xlu0 %v1752_v46, %s1795_s15  ;;  %1758 = vrot.lane.b32.xlu1 %v1757_v50, %s1796_s16 }
 0x4f8   :  { %1763 = vrot.lane.b32.xlu0 %v1762_v54, %s1795_s15  ;;  %1768 = vrot.lane.b32.xlu1 %v1767_v56, %s1797_s19  ;;  %v1155_v54 = vld [vmem:[%s2451_s5 + $0x8] sm:$0xff]  ;;  %v1154_v56 = vld [vmem:[%s2451_s5] sm:$0xff] }
 0x4f9   :  { %1579 = vmatpush3.msra.mxu1 %v1155_v54 }
 0x4fa   :  { %1580 = vmatprep.subr.mxu1 %v1794_v5 }
 0x4fb   :  { %1581 = vmatpush3.msra.mxu1 %v1154_v56 }
 0x55a   :  { %v1729_v44 = vpop.permute.xlu1 %1728 }
 0x55b   :  { %v1731_v16 = vunpack.i.h.bf16 %v1729_v44  ;;  %v1730_v60 = vunpack.i.l.bf16 %v1729_v44  ;;  %v1321_v44 = vld [vmem:[%s2450_s4 + $0x3] ss:$0 sm:$0xff] }
 0x55d   :  { %v972_v61 = vsel %vm27_vm2, %v2328_v7, %v1731_v16  ;;  %v971_v2 = vsel %vm27_vm2, %v2316_v3, %v1730_v60 }
 0x55e   :  { %v1744_v59 = vpop.permute.xlu0 %1743  ;;  %v1734_v18 = vpop.permute.xlu1 %1733 }
 0x55f   :  { %v1736_v20 = vunpack.i.h.bf16 %v1734_v18  ;;  %v1735_v23 = vunpack.i.l.bf16 %v1734_v18  ;;  %v1745_v13 = vunpack.i.l.bf16 %v1744_v59  ;;  %v1746_v24 = vunpack.i.h.bf16 %v1744_v59 }
 0x561   :  { %v974_v25 = vsel %vm217_vm5, %v971_v2, %v1735_v23  ;;  %v975_v8 = vsel %vm217_vm5, %v972_v61, %v1736_v20 }
 0x562   :  { %v1749_v63 = vpop.permute.xlu0 %1748  ;;  %v1739_v0 = vpop.permute.xlu1 %1738 }
 0x563   :  { %v1751_v6 = vunpack.i.h.bf16 %v1749_v63  ;;  %v1741_v62 = vunpack.i.h.bf16 %v1739_v0  ;;  %v1740_v55 = vunpack.i.l.bf16 %v1739_v0  ;;  %v1750_v47 = vunpack.i.l.bf16 %v1749_v63 }
 0x565   :  { %v977_v41 = vsel %vm221_vm6, %v974_v25, %v1740_v55  ;;  %v978_v10 = vsel %vm221_vm6, %v975_v8, %v1741_v62  ;;  %v1026_v3 = vsel %vm27_vm2, %v2334_v29, %v1751_v6  ;;  %v973_v37 = vsel %vm27_vm2, %v2319_v4, %v1750_v47  ;;  %v1322_v25 = vld [vmem:[%s2452_s6] ss:$0 sm:$0xff] }
 0x566   :  { %v1754_v49 = vpop.permute.xlu0 %1753  ;;  %v1759_v11 = vpop.permute.xlu1 %1758  ;;  %v1038_v7 = vrot.slane %v977_v41, 2  ;;  %v1039_v12 = vrot.slane %v978_v10, 2 }
 0x567   :  { %v1756_v14 = vunpack.i.h.bf16 %v1754_v49  ;;  %v1755_v17 = vunpack.i.l.bf16 %v1754_v49  ;;  %v1761_v19 = vunpack.i.h.bf16 %v1759_v11  ;;  %v1760_v21 = vunpack.i.l.bf16 %v1759_v11 }
 0x568   :  { %v1040_v30 = vsel %vm186_vm3, %v1038_v7, %v1039_v12 }
 0x569   :  { %v976_v28 = vsel %vm217_vm5, %v973_v37, %v1755_v17  ;;  %v1029_v22 = vsel %vm217_vm5, %v1026_v3, %v1756_v14  ;;  %1568 = vmatprep.mubr.f32.mxu0 %v1040_v30  ;;  %v1028_v4 = vsel %vm27_vm2, %v2358_v27, %v1761_v19  ;;  %v1027_v35 = vsel %vm27_vm2, %v2345_v15, %v1760_v21 }
 0x56a   :  { %v979_v48 = vsel %vm221_vm6, %v976_v28, %v1745_v13  ;;  %v1764_v26 = vpop.permute.xlu0 %1763  ;;  %v1769_v32 = vpop.permute.xlu1 %1768  ;;  %v1032_v36 = vsel %vm221_vm6, %v1029_v22, %v1746_v24 }
 0x56b   :  { %v1041_v29 = vrot.slane %v979_v48, 2  ;;  %v1766_v33 = vunpack.i.h.bf16 %v1764_v26  ;;  %v1765_v34 = vunpack.i.l.bf16 %v1764_v26  ;;  %v1771_v31 = vunpack.i.h.bf16 %v1769_v32 }
 0x56c   :  { %v1770_v1 = vunpack.i.l.bf16 %v1769_v32  ;;  %v1048_v27 = vrot.slane %v1032_v36, 2 }
 0x56d   :  { %v1030_v9 = vsel %vm217_vm5, %v1027_v35, %v1765_v34  ;;  %v1031_v38 = vsel %vm217_vm5, %v1028_v4, %v1766_v33  ;;  %v1042_v39 = vsel %vm186_vm3, %v1039_v12, %v1041_v29 }
 0x56e   :  { %v1033_v40 = vsel %vm221_vm6, %v1030_v9, %v1770_v1  ;;  %v1034_v42 = vsel %vm221_vm6, %v1031_v38, %v1771_v31  ;;  %1569 = vmatmul.mubr.f32.vlgmr.msra.gmra.mxu0 %v1042_v39 }
 0x56f   :  { %v1049_v45 = vrot.slane %v1033_v40, 2  ;;  %v1051_v46 = vrot.slane %v1034_v42, 2 }
 0x571   :  { %v1050_v50 = vsel %vm186_vm3, %v1048_v27, %v1049_v45  ;;  %v1052_v15 = vsel %vm186_vm3, %v1049_v45, %v1051_v46 }
 0x572   :  { %1571 = vmatprep.mubr.f32.mxu0 %v1050_v50 }
 0x573   :  { %1572 = vmatmul.mubr.f32.gmra.mxu0 %v1052_v15 }
 0x62e   :  { %v1570_v16 = vpop.f32.mrf.mxu0 }
 0x62f   :  { %v1132_v59 = vadd.f32 %v1570_v16, %v1321_v44 }
 0x630   :  { %v1127_v18 = vpop.f32.mrf.mxu0 }
 0x631   :  { %v1144_v60 = vmax.f32 %v1132_v59, 0.0 }
 0x633   :  { %v1146_v20 = vadd.f32 %v1144_v60, %v649_v51  ;;  %v1573_v23 = vpop.f32.mrf.mxu0 }
 0x634   :  { %v1141_v61 = vadd.f32 %v1573_v23, %v1321_v44 }
 0x635   :  { %v1136_v63 = vpop.f32.mrf.mxu0  ;;  %v1148_v0 = vmax.f32 %v1146_v20, 0.0 }
 0x636   :  { %v1145_v2 = vmax.f32 %v1141_v61, 0.0 }
 0x637   :  { %v1151_v6 = vrot.slane %v1148_v0, 4 }
 0x638   :  { %v1147_v5 = vadd.f32 %v1145_v2, %v651_v58 }
 0x63a   :  { %v1149_v62 = vmax.f32 %v1147_v5, 0.0 }
 0x63c   :  { %v1153_v55 = vsel %vm695_vm8, %v1151_v6, %v1149_v62 }
 0x63d   :  { %1583 = vmatmul.mubr.msk.f32.vlgmr.msra.gmra.mxu1 %vm27_vm2, %v1153_v55 }
 0x6fd   :  { %v1234_v43 = vpop.f32.mrf.mxu1 }
 0x6fe   :  { %v1235_v51 = vadd.f32 %v1322_v25, %v1234_v43 }
 0x6ff   :  { %v1584_v8 = vpop.f32.mrf.mxu1 }
 0x700   :  { %1239 = vst.msk [vmem:[#allocation3] sm:$0xf] %vm1238_vm11, %v1235_v51 }
 0x701   :  { %1242 = vst.msk [vmem:[#allocation3] sm:$0xf0] %vm1241_vm12, %v1235_v51 }
 0x702   :  { %1783 = shalt.err (!%p1780_p4)
}
 0x703   :  { %s1800_s14 = smov 4  }
 0x704   :  { %1254 = dma.vmem_to_hbm [thread:$0]  %s1249_s13, 128, %s2453_s7, [#allocation4], %s1795_s15, %s1795_s15, %s1800_s14  }
 0x705   :  { %1792 = dma.done.wait [#allocation4], 128  }
 0x706   :  { %1793 = vsyncadd [#allocation4], 4294967168 }
 0x707   :  { %1258 = vsyncpa [#allocation4], 1 }

</bundles_post_ra>
